<compile_context>
chip_gen: v7x
topology: tpu7x:2x2x1
jax: 0.10.0
libtpu: 0.0.40
codegen_flags: <defaults>
</compile_context>

<pallas_src>
import functools

import jax
import jax.numpy as jnp
from jax.experimental import pallas as pl
from jax.experimental.pallas import tpu as pltpu

EPS = 1e-5
LANES = 128


def _round_up(x, m):
    return (x + m - 1) // m * m


def _fused_kernel(x_ref, w_ref, gb_ref, o_ref, stats_ref,
                  *, kh, kw, oh, ow, stride, c_out, inv_m):
    """grid = (phase, n).

    phase 0: conv(image n) -> accumulate per-channel sum / sumsq into stats_ref.
    phase 1: conv(image n) -> y*scale + shift -> ReLU -> store (C_out, OH*OW).
    """
    phase = pl.program_id(0)
    n = pl.program_id(1)
    c_in = x_ref.shape[-1]
    c_pad = w_ref.shape[-1]
    ohw = oh * ow

    @pl.when((phase == 0) & (n == 0))
    def _init():
        stats_ref[...] = jnp.zeros_like(stats_ref)

    # ---- conv: kh*kw shifted-slice matmuls, accumulated in a local value ----
    acc = jnp.zeros((ohw, c_pad), jnp.float32)
    for i in range(kh):
        for j in range(kw):
            if stride == 1:
                xs = x_ref[0, i:i + oh, j:j + ow, :]
            else:
                # TODO(synk): strided ref slice untested (demo uses stride=1).
                xs = x_ref[0, pl.ds(i, oh, stride=stride),
                           pl.ds(j, ow, stride=stride), :]
            lhs = xs.reshape(ohw, c_in)
            acc = acc + jnp.dot(lhs, w_ref[i * kw + j],
                                preferred_element_type=jnp.float32)

    # One tile-aligned transpose -> channels on sublanes, spatial on lanes.
    y = jnp.transpose(acc)[:c_out, :]          # (C_out, OH*OW)

    @pl.when(phase == 0)
    def _stats():
        # TODO(synk): E[x^2]-E[x]^2 is cancellation-prone for far-from-zero
        # channel means; switch to shifted sums if inputs aren't near zero-mean.
        stats_ref[:, 0:1] += jnp.sum(y, axis=1, keepdims=True)
        stats_ref[:, 1:2] += jnp.sum(y * y, axis=1, keepdims=True)

    @pl.when(phase == 1)
    def _apply():
        mean = stats_ref[:, 0:1] * inv_m
        var = stats_ref[:, 1:2] * inv_m - mean * mean
        inv_std = jax.lax.rsqrt(var + EPS)
        scale = gb_ref[:, 0:1] * inv_std                 # gamma * inv_std
        shift = gb_ref[:, 1:2] - mean * scale            # beta - mean*scale
        o_ref[0] = jnp.maximum(y * scale + shift, 0.0).astype(o_ref.dtype)
    # phase 0 intentionally leaves o_ref untouched; the same output block is
    # fully overwritten in phase 1 (sequential grid), so the final HBM result
    # is correct.


@functools.partial(jax.jit, static_argnames=("kernel_size", "stride", "padding"))
def conv_bn_relu_forward(x, weight, gamma, beta, *, kernel_size, stride, padding):
    """x: (N, C_in, H, W); weight: (C_out, C_in, KH, KW); gamma/beta: (C_out,)."""
    N, C_in, H, W = x.shape
    C_out = weight.shape[0]
    kh = kw = kernel_size
    Hp, Wp = H + 2 * padding, W + 2 * padding
    OH = (Hp - kh) // stride + 1
    OW = (Wp - kw) // stride + 1
    OHW = OH * OW
    C_pad = _round_up(C_out, LANES)            # MXU-lane width for the matmul only

    # NHWC + spatial zero-pad (no im2col blowup, ~1x input HBM bytes).
    x_nhwc = jnp.transpose(x, (0, 2, 3, 1)).astype(jnp.float32)
    x_pad = jnp.pad(x_nhwc,
                    ((0, 0), (padding, padding), (padding, padding), (0, 0)))

    # Weights: (C_out, C_in, kh, kw) -> (kh*kw, C_in, C_pad); padded columns are
    # zeros (the padded channels never reach the output store).
    wp = jnp.transpose(weight, (2, 3, 1, 0)).reshape(kh * kw, C_in, C_out)
    wp = jnp.pad(wp, ((0, 0), (0, 0), (0, C_pad - C_out))).astype(jnp.float32)

    # gamma / beta packed as (C_out, 2) columns (sublane orientation matches y).
    gb = jnp.stack([gamma, beta], axis=1).astype(jnp.float32)

    kernel = functools.partial(
        _fused_kernel, kh=kh, kw=kw, oh=OH, ow=OW, stride=stride,
        c_out=C_out, inv_m=1.0 / float(N * OHW))

    out = pl.pallas_call(
        kernel,
        out_shape=jax.ShapeDtypeStruct((N, C_out, OHW), jnp.float32),
        grid_spec=pltpu.PrefetchScalarGridSpec(
            num_scalar_prefetch=0,
            grid=(2, N),                       # (phase, batch)
            in_specs=[
                pl.BlockSpec((1, Hp, Wp, C_in), lambda p, n: (n, 0, 0, 0)),
                pl.BlockSpec((kh * kw, C_in, C_pad), lambda p, n: (0, 0, 0)),
                pl.BlockSpec((C_out, 2), lambda p, n: (0, 0)),
            ],
            out_specs=pl.BlockSpec((1, C_out, OHW), lambda p, n: (n, 0, 0)),
            scratch_shapes=[pltpu.VMEM((C_out, 2), jnp.float32)],  # sum / sumsq
        ),
        # Stats carry across both grid axes -> fully sequential.
        compiler_params=pltpu.CompilerParams(
            dimension_semantics=("arbitrary", "arbitrary")),
    )(x_pad, wp, gb)

    # Output is already channel-major: (N, C_out, OH*OW) -> NCHW is a free reshape.
    return out.reshape(N, C_out, OH, OW)


def _reference(x, weight, gamma, beta, *, stride, padding):
    """Plain-JAX reference: conv -> training-mode BN -> ReLU."""
    y = jax.lax.conv_general_dilated(
        x, weight, window_strides=(stride, stride),
        padding=[(padding, padding), (padding, padding)],
        dimension_numbers=("NCHW", "OIHW", "NCHW"))
    mean = jnp.mean(y, axis=(0, 2, 3), keepdims=True)
    var = jnp.mean((y - mean) ** 2, axis=(0, 2, 3), keepdims=True)
    yn = (y - mean) / jnp.sqrt(var + EPS)
    yn = yn * gamma.reshape(1, -1, 1, 1) + beta.reshape(1, -1, 1, 1)
    return jnp.maximum(yn, 0.0)


if __name__ == "__main__":
    # forOriginal(in_channels=4, out_channels=8, kernel_size=3, stride=1, padding=1)
    N, C_in, H, W = 2, 4, 16, 16
    C_out, ksize, stride, padding = 8, 3, 1, 1

    key = jax.random.PRNGKey(0)
    kx, kw_ = jax.random.split(key)
    x = jax.random.normal(kx, (N, C_in, H, W), dtype=jnp.float32)
    weight = jax.random.normal(kw_, (C_out, C_in, ksize, ksize),
                               dtype=jnp.float32) * 0.1
    # BatchNorm2d affine params at their PyTorch init values.
    gamma = jnp.ones((C_out,), dtype=jnp.float32)
    beta = jnp.zeros((C_out,), dtype=jnp.float32)

    out = conv_bn_relu_forward(x, weight, gamma, beta,
                               kernel_size=ksize, stride=stride, padding=padding)
    out = jax.block_until_ready(out)

    ref = jax.block_until_ready(
        _reference(x, weight, gamma, beta, stride=stride, padding=padding))
    assert out.shape == ref.shape == (N, C_out, H, W)
    assert jnp.allclose(out, ref, atol=1e-4, rtol=1e-4), "mismatch vs reference"

    print("KERNEL_OK")
</pallas_src>

<mosaic_0001>
module attributes {stable_mosaic.version = 11 : i64} {
  func.func @_fused_kernel(%arg0: i32, %arg1: i32, %arg2: memref<1x18x18x4xf32, #tpu.memory_space<vmem>>, %arg3: memref<9x4x128xf32, #tpu.memory_space<vmem>>, %arg4: memref<8x2xf32, #tpu.memory_space<vmem>>, %arg5: memref<1x8x256xf32, #tpu.memory_space<vmem>>, %arg6: memref<8x2xf32, #tpu.memory_space<vmem>>) attributes {dimension_semantics = [#tpu.dimension_semantics<arbitrary>, #tpu.dimension_semantics<arbitrary>], iteration_bounds = array<i64: 2, 2>, scalar_prefetch = 0 : i64, scratch_operands = 1 : i64, tpu.core_type = #tpu.core_type<tc>, window_params = [{transform_indices = @transform_0, window_bounds = array<i64: 1, 18, 18, 4>}, {pipeline_mode = #tpu.pipeline_mode<synchronous>, transform_indices = @transform_1, window_bounds = array<i64: 9, 4, 128>}, {pipeline_mode = #tpu.pipeline_mode<synchronous>, transform_indices = @transform_2, window_bounds = array<i64: 8, 2>}, {transform_indices = @transform_3, window_bounds = array<i64: 1, 8, 256>}]} {
    %c0_i32 = arith.constant 0 : i32
    %0 = arith.cmpi eq, %arg0, %c0_i32 : i32
    %c0_i32_0 = arith.constant 0 : i32
    %1 = arith.cmpi eq, %arg1, %c0_i32_0 : i32
    %2 = arith.andi %0, %1 : i1
    %3 = arith.extui %2 : i1 to i32
    %c0_i32_1 = arith.constant 0 : i32
    %4 = arith.cmpi ne, %3, %c0_i32_1 : i32
    scf.if %4 {
      %cst_68 = arith.constant 0.000000e+00 : f32
      %77 = vector.broadcast %cst_68 : f32 to vector<8x2xf32>
      %c0_69 = arith.constant 0 : index
      %c0_70 = arith.constant 0 : index
      %78 = vector.load %arg6[%c0_69, %c0_70] : memref<8x2xf32, #tpu.memory_space<vmem>>, vector<8x2xf32>
      tpu.vector_store %arg6[%c0_69, %c0_70], %77 {strides = array<i32>} : memref<8x2xf32, #tpu.memory_space<vmem>>, vector<8x2xf32>,
    } else {
    }
    %cst = arith.constant 0.000000e+00 : f32
    %5 = vector.broadcast %cst : f32 to vector<256x128xf32>
    %c0 = arith.constant 0 : index
    %c0_2 = arith.constant 0 : index
    %c0_3 = arith.constant 0 : index
    %c0_4 = arith.constant 0 : index
    %6 = vector.load %arg2[%c0, %c0_2, %c0_3, %c0_4] : memref<1x18x18x4xf32, #tpu.memory_space<vmem>>, vector<1x16x16x4xf32>
    %7 = vector.shape_cast %6 : vector<1x16x16x4xf32> to vector<16x16x4xf32>
    %8 = vector.shape_cast %7 : vector<16x16x4xf32> to vector<256x4xf32>
    %c0_5 = arith.constant 0 : index
    %c0_6 = arith.constant 0 : index
    %c0_7 = arith.constant 0 : index
    %9 = vector.load %arg3[%c0_5, %c0_6, %c0_7] : memref<9x4x128xf32, #tpu.memory_space<vmem>>, vector<1x4x128xf32>
    %10 = vector.shape_cast %9 : vector<1x4x128xf32> to vector<4x128xf32>
    %cst_8 = arith.constant dense<0.000000e+00> : vector<256x128xf32>
    %11 = tpu.matmul %8, %10, %cst_8 {dimension_numbers = #tpu.dot_dimension_numbers<[1], [0], [0], [1], [0, 0, 1, 1], [], []>} : vector<256x4xf32>, vector<4x128xf32>, vector<256x128xf32> -> vector<256x128xf32>
    %12 = arith.addf %5, %11 : vector<256x128xf32>
    %c0_9 = arith.constant 0 : index
    %c0_10 = arith.constant 0 : index
    %c1 = arith.constant 1 : index
    %c0_11 = arith.constant 0 : index
    %13 = vector.load %arg2[%c0_9, %c0_10, %c1, %c0_11] : memref<1x18x18x4xf32, #tpu.memory_space<vmem>>, vector<1x16x16x4xf32>
    %14 = vector.shape_cast %13 : vector<1x16x16x4xf32> to vector<16x16x4xf32>
    %15 = vector.shape_cast %14 : vector<16x16x4xf32> to vector<256x4xf32>
    %c1_12 = arith.constant 1 : index
    %c0_13 = arith.constant 0 : index
    %c0_14 = arith.constant 0 : index
    %16 = vector.load %arg3[%c1_12, %c0_13, %c0_14] : memref<9x4x128xf32, #tpu.memory_space<vmem>>, vector<1x4x128xf32>
    %17 = vector.shape_cast %16 : vector<1x4x128xf32> to vector<4x128xf32>
    %cst_15 = arith.constant dense<0.000000e+00> : vector<256x128xf32>
    %18 = tpu.matmul %15, %17, %cst_15 {dimension_numbers = #tpu.dot_dimension_numbers<[1], [0], [0], [1], [0, 0, 1, 1], [], []>} : vector<256x4xf32>, vector<4x128xf32>, vector<256x128xf32> -> vector<256x128xf32>
    %19 = arith.addf %12, %18 : vector<256x128xf32>
    %c0_16 = arith.constant 0 : index
    %c0_17 = arith.constant 0 : index
    %c2 = arith.constant 2 : index
    %c0_18 = arith.constant 0 : index
    %20 = vector.load %arg2[%c0_16, %c0_17, %c2, %c0_18] : memref<1x18x18x4xf32, #tpu.memory_space<vmem>>, vector<1x16x16x4xf32>
    %21 = vector.shape_cast %20 : vector<1x16x16x4xf32> to vector<16x16x4xf32>
    %22 = vector.shape_cast %21 : vector<16x16x4xf32> to vector<256x4xf32>
    %c2_19 = arith.constant 2 : index
    %c0_20 = arith.constant 0 : index
    %c0_21 = arith.constant 0 : index
    %23 = vector.load %arg3[%c2_19, %c0_20, %c0_21] : memref<9x4x128xf32, #tpu.memory_space<vmem>>, vector<1x4x128xf32>
    %24 = vector.shape_cast %23 : vector<1x4x128xf32> to vector<4x128xf32>
    %cst_22 = arith.constant dense<0.000000e+00> : vector<256x128xf32>
    %25 = tpu.matmul %22, %24, %cst_22 {dimension_numbers = #tpu.dot_dimension_numbers<[1], [0], [0], [1], [0, 0, 1, 1], [], []>} : vector<256x4xf32>, vector<4x128xf32>, vector<256x128xf32> -> vector<256x128xf32>
    %26 = arith.addf %19, %25 : vector<256x128xf32>
    %c0_23 = arith.constant 0 : index
    %c1_24 = arith.constant 1 : index
    %c0_25 = arith.constant 0 : index
    %c0_26 = arith.constant 0 : index
    %27 = vector.load %arg2[%c0_23, %c1_24, %c0_25, %c0_26] : memref<1x18x18x4xf32, #tpu.memory_space<vmem>>, vector<1x16x16x4xf32>
    %28 = vector.shape_cast %27 : vector<1x16x16x4xf32> to vector<16x16x4xf32>
    %29 = vector.shape_cast %28 : vector<16x16x4xf32> to vector<256x4xf32>
    %c3 = arith.constant 3 : index
    %c0_27 = arith.constant 0 : index
    %c0_28 = arith.constant 0 : index
    %30 = vector.load %arg3[%c3, %c0_27, %c0_28] : memref<9x4x128xf32, #tpu.memory_space<vmem>>, vector<1x4x128xf32>
    %31 = vector.shape_cast %30 : vector<1x4x128xf32> to vector<4x128xf32>
    %cst_29 = arith.constant dense<0.000000e+00> : vector<256x128xf32>
    %32 = tpu.matmul %29, %31, %cst_29 {dimension_numbers = #tpu.dot_dimension_numbers<[1], [0], [0], [1], [0, 0, 1, 1], [], []>} : vector<256x4xf32>, vector<4x128xf32>, vector<256x128xf32> -> vector<256x128xf32>
    %33 = arith.addf %26, %32 : vector<256x128xf32>
    %c0_30 = arith.constant 0 : index
    %c1_31 = arith.constant 1 : index
    %c1_32 = arith.constant 1 : index
    %c0_33 = arith.constant 0 : index
    %34 = vector.load %arg2[%c0_30, %c1_31, %c1_32, %c0_33] : memref<1x18x18x4xf32, #tpu.memory_space<vmem>>, vector<1x16x16x4xf32>
    %35 = vector.shape_cast %34 : vector<1x16x16x4xf32> to vector<16x16x4xf32>
    %36 = vector.shape_cast %35 : vector<16x16x4xf32> to vector<256x4xf32>
    %c4 = arith.constant 4 : index
    %c0_34 = arith.constant 0 : index
    %c0_35 = arith.constant 0 : index
    %37 = vector.load %arg3[%c4, %c0_34, %c0_35] : memref<9x4x128xf32, #tpu.memory_space<vmem>>, vector<1x4x128xf32>
    %38 = vector.shape_cast %37 : vector<1x4x128xf32> to vector<4x128xf32>
    %cst_36 = arith.constant dense<0.000000e+00> : vector<256x128xf32>
    %39 = tpu.matmul %36, %38, %cst_36 {dimension_numbers = #tpu.dot_dimension_numbers<[1], [0], [0], [1], [0, 0, 1, 1], [], []>} : vector<256x4xf32>, vector<4x128xf32>, vector<256x128xf32> -> vector<256x128xf32>
    %40 = arith.addf %33, %39 : vector<256x128xf32>
    %c0_37 = arith.constant 0 : index
    %c1_38 = arith.constant 1 : index
    %c2_39 = arith.constant 2 : index
    %c0_40 = arith.constant 0 : index
    %41 = vector.load %arg2[%c0_37, %c1_38, %c2_39, %c0_40] : memref<1x18x18x4xf32, #tpu.memory_space<vmem>>, vector<1x16x16x4xf32>
    %42 = vector.shape_cast %41 : vector<1x16x16x4xf32> to vector<16x16x4xf32>
    %43 = vector.shape_cast %42 : vector<16x16x4xf32> to vector<256x4xf32>
    %c5 = arith.constant 5 : index
    %c0_41 = arith.constant 0 : index
    %c0_42 = arith.constant 0 : index
    %44 = vector.load %arg3[%c5, %c0_41, %c0_42] : memref<9x4x128xf32, #tpu.memory_space<vmem>>, vector<1x4x128xf32>
    %45 = vector.shape_cast %44 : vector<1x4x128xf32> to vector<4x128xf32>
    %cst_43 = arith.constant dense<0.000000e+00> : vector<256x128xf32>
    %46 = tpu.matmul %43, %45, %cst_43 {dimension_numbers = #tpu.dot_dimension_numbers<[1], [0], [0], [1], [0, 0, 1, 1], [], []>} : vector<256x4xf32>, vector<4x128xf32>, vector<256x128xf32> -> vector<256x128xf32>
    %47 = arith.addf %40, %46 : vector<256x128xf32>
    %c0_44 = arith.constant 0 : index
    %c2_45 = arith.constant 2 : index
    %c0_46 = arith.constant 0 : index
    %c0_47 = arith.constant 0 : index
    %48 = vector.load %arg2[%c0_44, %c2_45, %c0_46, %c0_47] : memref<1x18x18x4xf32, #tpu.memory_space<vmem>>, vector<1x16x16x4xf32>
    %49 = vector.shape_cast %48 : vector<1x16x16x4xf32> to vector<16x16x4xf32>
    %50 = vector.shape_cast %49 : vector<16x16x4xf32> to vector<256x4xf32>
    %c6 = arith.constant 6 : index
    %c0_48 = arith.constant 0 : index
    %c0_49 = arith.constant 0 : index
    %51 = vector.load %arg3[%c6, %c0_48, %c0_49] : memref<9x4x128xf32, #tpu.memory_space<vmem>>, vector<1x4x128xf32>
    %52 = vector.shape_cast %51 : vector<1x4x128xf32> to vector<4x128xf32>
    %cst_50 = arith.constant dense<0.000000e+00> : vector<256x128xf32>
    %53 = tpu.matmul %50, %52, %cst_50 {dimension_numbers = #tpu.dot_dimension_numbers<[1], [0], [0], [1], [0, 0, 1, 1], [], []>} : vector<256x4xf32>, vector<4x128xf32>, vector<256x128xf32> -> vector<256x128xf32>
    %54 = arith.addf %47, %53 : vector<256x128xf32>
    %c0_51 = arith.constant 0 : index
    %c2_52 = arith.constant 2 : index
    %c1_53 = arith.constant 1 : index
    %c0_54 = arith.constant 0 : index
    %55 = vector.load %arg2[%c0_51, %c2_52, %c1_53, %c0_54] : memref<1x18x18x4xf32, #tpu.memory_space<vmem>>, vector<1x16x16x4xf32>
    %56 = vector.shape_cast %55 : vector<1x16x16x4xf32> to vector<16x16x4xf32>
    %57 = vector.shape_cast %56 : vector<16x16x4xf32> to vector<256x4xf32>
    %c7 = arith.constant 7 : index
    %c0_55 = arith.constant 0 : index
    %c0_56 = arith.constant 0 : index
    %58 = vector.load %arg3[%c7, %c0_55, %c0_56] : memref<9x4x128xf32, #tpu.memory_space<vmem>>, vector<1x4x128xf32>
    %59 = vector.shape_cast %58 : vector<1x4x128xf32> to vector<4x128xf32>
    %cst_57 = arith.constant dense<0.000000e+00> : vector<256x128xf32>
    %60 = tpu.matmul %57, %59, %cst_57 {dimension_numbers = #tpu.dot_dimension_numbers<[1], [0], [0], [1], [0, 0, 1, 1], [], []>} : vector<256x4xf32>, vector<4x128xf32>, vector<256x128xf32> -> vector<256x128xf32>
    %61 = arith.addf %54, %60 : vector<256x128xf32>
    %c0_58 = arith.constant 0 : index
    %c2_59 = arith.constant 2 : index
    %c2_60 = arith.constant 2 : index
    %c0_61 = arith.constant 0 : index
    %62 = vector.load %arg2[%c0_58, %c2_59, %c2_60, %c0_61] : memref<1x18x18x4xf32, #tpu.memory_space<vmem>>, vector<1x16x16x4xf32>
    %63 = vector.shape_cast %62 : vector<1x16x16x4xf32> to vector<16x16x4xf32>
    %64 = vector.shape_cast %63 : vector<16x16x4xf32> to vector<256x4xf32>
    %c8 = arith.constant 8 : index
    %c0_62 = arith.constant 0 : index
    %c0_63 = arith.constant 0 : index
    %65 = vector.load %arg3[%c8, %c0_62, %c0_63] : memref<9x4x128xf32, #tpu.memory_space<vmem>>, vector<1x4x128xf32>
    %66 = vector.shape_cast %65 : vector<1x4x128xf32> to vector<4x128xf32>
    %cst_64 = arith.constant dense<0.000000e+00> : vector<256x128xf32>
    %67 = tpu.matmul %64, %66, %cst_64 {dimension_numbers = #tpu.dot_dimension_numbers<[1], [0], [0], [1], [0, 0, 1, 1], [], []>} : vector<256x4xf32>, vector<4x128xf32>, vector<256x128xf32> -> vector<256x128xf32>
    %68 = arith.addf %61, %67 : vector<256x128xf32>
    %69 = tpu.transpose %68, [1, 0] : vector<256x128xf32> -> vector<128x256xf32>
    %70 = vector.extract_strided_slice %69 {offsets = [0, 0], sizes = [8, 256], strides = [1, 1]} : vector<128x256xf32> to vector<8x256xf32>
    %c0_i32_65 = arith.constant 0 : i32
    %71 = arith.cmpi eq, %arg0, %c0_i32_65 : i32
    %72 = arith.extui %71 : i1 to i32
    %c0_i32_66 = arith.constant 0 : i32
    %73 = arith.cmpi ne, %72, %c0_i32_66 : i32
    scf.if %73 {
      %c0_68 = arith.constant 0 : index
      %c0_69 = arith.constant 0 : index
      %77 = vector.load %arg6[%c0_68, %c0_69] : memref<8x2xf32, #tpu.memory_space<vmem>>, vector<8x1xf32>
      %cst_70 = arith.constant dense<0.000000e+00> : vector<8xf32>
      %78 = vector.multi_reduction <add>, %70, %cst_70 [1] : vector<8x256xf32> to vector<8xf32>
      %79 = vector.shape_cast %78 : vector<8xf32> to vector<8x1xf32>
      %80 = arith.addf %77, %79 : vector<8x1xf32>
      %c0_71 = arith.constant 0 : index
      %c0_72 = arith.constant 0 : index
      %81 = vector.load %arg6[%c0_71, %c0_72] : memref<8x2xf32, #tpu.memory_space<vmem>>, vector<8x1xf32>
      tpu.vector_store %arg6[%c0_71, %c0_72], %80 {strides = array<i32>} : memref<8x2xf32, #tpu.memory_space<vmem>>, vector<8x1xf32>,
      %c0_73 = arith.constant 0 : index
      %c1_74 = arith.constant 1 : index
      %82 = vector.load %arg6[%c0_73, %c1_74] : memref<8x2xf32, #tpu.memory_space<vmem>>, vector<8x1xf32>
      %83 = arith.mulf %70, %70 : vector<8x256xf32>
      %cst_75 = arith.constant dense<0.000000e+00> : vector<8xf32>
      %84 = vector.multi_reduction <add>, %83, %cst_75 [1] : vector<8x256xf32> to vector<8xf32>
      %85 = vector.shape_cast %84 : vector<8xf32> to vector<8x1xf32>
      %86 = arith.addf %82, %85 : vector<8x1xf32>
      %c0_76 = arith.constant 0 : index
      %c1_77 = arith.constant 1 : index
      %87 = vector.load %arg6[%c0_76, %c1_77] : memref<8x2xf32, #tpu.memory_space<vmem>>, vector<8x1xf32>
      tpu.vector_store %arg6[%c0_76, %c1_77], %86 {strides = array<i32>} : memref<8x2xf32, #tpu.memory_space<vmem>>, vector<8x1xf32>,
    } else {
    }
    %c1_i32 = arith.constant 1 : i32
    %74 = arith.cmpi eq, %arg0, %c1_i32 : i32
    %75 = arith.extui %74 : i1 to i32
    %c0_i32_67 = arith.constant 0 : i32
    %76 = arith.cmpi ne, %75, %c0_i32_67 : i32
    scf.if %76 {
      %c0_68 = arith.constant 0 : index
      %c0_69 = arith.constant 0 : index
      %77 = vector.load %arg6[%c0_68, %c0_69] : memref<8x2xf32, #tpu.memory_space<vmem>>, vector<8x1xf32>
      %cst_70 = arith.constant 0.001953125 : f32
      %78 = vector.broadcast %cst_70 : f32 to vector<8x1xf32>
      %79 = arith.mulf %77, %78 : vector<8x1xf32>
      %c0_71 = arith.constant 0 : index
      %c1_72 = arith.constant 1 : index
      %80 = vector.load %arg6[%c0_71, %c1_72] : memref<8x2xf32, #tpu.memory_space<vmem>>, vector<8x1xf32>
      %cst_73 = arith.constant 0.001953125 : f32
      %81 = vector.broadcast %cst_73 : f32 to vector<8x1xf32>
      %82 = arith.mulf %80, %81 : vector<8x1xf32>
      %83 = arith.mulf %79, %79 : vector<8x1xf32>
      %84 = arith.subf %82, %83 : vector<8x1xf32>
      %cst_74 = arith.constant 9.99999974E-6 : f32
      %85 = vector.broadcast %cst_74 : f32 to vector<8x1xf32>
      %86 = arith.addf %84, %85 : vector<8x1xf32>
      %87 = math.rsqrt %86 : vector<8x1xf32>
      %c0_75 = arith.constant 0 : index
      %c0_76 = arith.constant 0 : index
      %88 = vector.load %arg4[%c0_75, %c0_76] : memref<8x2xf32, #tpu.memory_space<vmem>>, vector<8x1xf32>
      %89 = arith.mulf %88, %87 : vector<8x1xf32>
      %c0_77 = arith.constant 0 : index
      %c1_78 = arith.constant 1 : index
      %90 = vector.load %arg4[%c0_77, %c1_78] : memref<8x2xf32, #tpu.memory_space<vmem>>, vector<8x1xf32>
      %91 = arith.mulf %79, %89 : vector<8x1xf32>
      %92 = arith.subf %90, %91 : vector<8x1xf32>
      %93 = vector.broadcast %89 : vector<8x1xf32> to vector<8x256xf32>
      %94 = arith.mulf %70, %93 : vector<8x256xf32>
      %95 = vector.broadcast %92 : vector<8x1xf32> to vector<8x256xf32>
      %96 = arith.addf %94, %95 : vector<8x256xf32>
      %cst_79 = arith.constant 0.000000e+00 : f32
      %97 = vector.broadcast %cst_79 : f32 to vector<8x256xf32>
      %98 = arith.maximumf %96, %97 : vector<8x256xf32>
      %c0_80 = arith.constant 0 : index
      %c0_81 = arith.constant 0 : index
      %c0_82 = arith.constant 0 : index
      %99 = vector.load %arg5[%c0_80, %c0_81, %c0_82] : memref<1x8x256xf32, #tpu.memory_space<vmem>>, vector<1x8x256xf32>
      %100 = vector.shape_cast %99 : vector<1x8x256xf32> to vector<8x256xf32>
      %101 = vector.shape_cast %98 : vector<8x256xf32> to vector<1x8x256xf32>
      tpu.vector_store %arg5[%c0_80, %c0_81, %c0_82], %101 {strides = array<i32>} : memref<1x8x256xf32, #tpu.memory_space<vmem>>, vector<1x8x256xf32>,
    } else {
    }
    return
  }
  func.func @transform_0(%arg0: i32, %arg1: i32) -> (i32, i32, i32, i32) {
    %c0_i32 = arith.constant 0 : i32
    %c0_i32_0 = arith.constant 0 : i32
    %c0_i32_1 = arith.constant 0 : i32
    %c0_i32_2 = arith.constant 0 : i32
    return %arg1, %c0_i32, %c0_i32_0, %c0_i32_1 : i32, i32, i32, i32
  }
  func.func @transform_1(%arg0: i32, %arg1: i32) -> (i32, i32, i32) {
    %c0_i32 = arith.constant 0 : i32
    %c0_i32_0 = arith.constant 0 : i32
    %c0_i32_1 = arith.constant 0 : i32
    %c0_i32_2 = arith.constant 0 : i32
    return %c0_i32, %c0_i32_0, %c0_i32_1 : i32, i32, i32
  }
  func.func @transform_2(%arg0: i32, %arg1: i32) -> (i32, i32) {
    %c0_i32 = arith.constant 0 : i32
    %c0_i32_0 = arith.constant 0 : i32
    %c0_i32_1 = arith.constant 0 : i32
    return %c0_i32, %c0_i32_0 : i32, i32
  }
  func.func @transform_3(%arg0: i32, %arg1: i32) -> (i32, i32, i32) {
    %c0_i32 = arith.constant 0 : i32
    %c0_i32_0 = arith.constant 0 : i32
    %c0_i32_1 = arith.constant 0 : i32
    return %arg1, %c0_i32, %c0_i32_0 : i32, i32, i32
  }
}

</mosaic_0001>

<bundles_post_ra>
// kernel: conv_bn_relu_forward.1
= control target key start
LH: loop header
LB: loop body
LE: loop exit
PB: predicated region body
PF: predicated region fallthrough
CT: control target
= control target key end

     0   :  { %s5463_s12 = smov 0   ;;  %s5465_s13 = smov 0   ;;  %s6456_s0 = inlined_call_operand.vmem [shape: f32[2,18,18,4], index: 0, kind: input, shape index: {}]   ;;  %s6457_s1 = inlined_call_operand.vmem [shape: f32[9,4,128], index: 1, kind: input, shape index: {}]   ;;  %s6458_s2 = inlined_call_operand.vmem [shape: f32[8,2], index: 2, kind: input, shape index: {}]   ;;  %s6459_s3 = inlined_call_operand.vmem [shape: f32[2,8,256], index: 3, kind: output, shape index: {}]  }
   0x1   :  { %s5467_s14 = smov 0   ;;  %s5469_s15 = smov 0  }
   0x2   :  { %s5471_s16 = smov 0  }
   0x3 LB: > { %s22_s17 = sadd.s32 1, %s5428_s14  ;;  %s25_s18 = sadd.s32 1, %s5432_s15  ;;  %s5436_s16 = sphi %s5471_s16, %s13_s16   ;;  %s5432_s15 = sphi %s5469_s15, %s6572_s15   ;;  %s5428_s14 = sphi %s5467_s14, %s6571_s14   ;;  %s5424_s13 = sphi %s5465_s13, %s6570_s13   ;;  %s5420_s12 = sphi %s5463_s12, %s6569_s12  }
   0x4   : > { %p23_p0 = scmp.ge.s32.totalorder %s22_s17, 2  ;;  %p3837_p1 = scmp.ge.s32.totalorder %s5436_s16, 1 }
   0x5   : > { %p149_p2 = scmp.lt.s32.totalorder %s5436_s16, 5 }
   0x6   : > { %s6574_s17 = smov (%p23_p0, %s22_s17), 0  ;;  %s6576_s18 = smov (!%p23_p0, %s25_s18), %s5432_s15 }
   0x7   : > { %p150_p3 = pnand %p3837_p1, %p149_p2  ;;  %p27_p4 = scmp.ge.s32.totalorder %s6576_s18, 2 }
   0x9   : > { %s6578_s18 = smov (%p27_p4, %s6576_s18), 0  ;;  %153 = sbr.rel (%p150_p3) target bundleno = 1301 (0x515), region = 32 }
  0x10   : > { %p173_p5 = scmp.lt.s32.totalorder %s5420_s12, 1  ;;  %p183_p6 = scmp.eq.s32.totalorder %s5424_s13, 0 }
  0x11   : > { %p184_p7 = scmp.eq.s32.totalorder %s5420_s12, 0 }
  0x12   : > { %s6580_s12 = smov (!%p173_p5, %s5420_s12), 1 }
  0x13   : > { %p185_p8 = pnand %p184_p7, %p183_p6  ;;  %s5348_s19 = smul.u32 432, %s6580_s12 }
  0x14   : > { %s4342_s20 = sshll.u32 %s6580_s12, 4  ;;  %vm189_vm0 = vcmask (!%p185_p8), 15360   ;;  %v5438_v0 = vmov (!%p185_p8), 0.0  }
  0x15   : > { %s5499_s23 = scalar_lea.vmem %s6459_s3, %s4342_s20  ;;  %s5504_s26 = scalar_lea.vmem %s6456_s0, %s5348_s19  ;;  %190 = vst.msk [vmem:[#allocation2] sm:$0xff] (!%p185_p8), %vm189_vm0, %v5438_v0 }
  0x16   : > { %188 = sbr.rel (%p185_p8) target bundleno = 29 (0x1d), region = 36 }
  0x1d PF: > { %v3841_v1 = vld [vmem:[%s6457_s1 + $0x4] sm:$0xf]  ;;  %vm355_vm1 = vcmask 1043456   ;;  %v5512_v2 = vld [vmem:[%s6457_s1 + $0x10] sm:$0xf]  ;;  %vm258_vm2 = vcmask 31744  }
  0x1e   : > { %v224_v3 = vld [vmem:[%s5504_s26 + $0x1] sm:$0xff]  ;;  %4640 = vmatprep.subr.msk.mxu1 %vm355_vm1, %v3841_v1  ;;  %4840 = vmatprep.subr.msk.mxu0 %vm355_vm1, %v5512_v2  ;;  %v4008_v4 = vld [vmem:[%s5504_s26 + $0x19] sm:$0xff]  ;;  %v225_v5 = vld [vmem:[%s5504_s26 + $0x9] sm:$0xff]  ;;  %p4338_p9 = scmp.ne.s32.totalorder %s5424_s13, 0 }
  0x1f   : > { %v223_v6 = vld [vmem:[%s6457_s1] sm:$0xf]  ;;  %4641 = vmatpush3.msk.msra.mxu1 %vm355_vm1, %v3841_v1  ;;  %4642 = vmatprep.mubr.msk.f32.mxu1 %vm258_vm2, %v224_v3  ;;  %v4106_v8 = vld [vmem:[%s6457_s1 + $0x14] sm:$0xf]  ;;  %v5548_v11 = vld [vmem:[%s5504_s26 + $0x49] sm:$0xff]  ;;  %vm3712_vm3 = vcmask (!%p4338_p9), 7168  }
  0x20   : > { %v4009_v7 = vld [vmem:[%s5504_s26 + $0x21] sm:$0xff]  ;;  %4841 = vmatpush3.msk.msra.mxu0 %vm355_vm1, %v5512_v2  ;;  %4842 = vmatprep.mubr.msk.f32.mxu0 %vm258_vm2, %v4008_v4  ;;  %v5535_v9 = vld [vmem:[%s5504_s26 + $0x31] sm:$0xff]  ;;  %v5542_v10 = vld [vmem:[%s5504_s26 + $0x39] sm:$0xff]  ;;  %vm3721_vm4 = vcmask (!%p4338_p9), 15368  }
  0x21   : > { %4643 = vmatmul.mubr.msk.f32.vlgmr.msra.gmra.mrb[0].mxu1 %vm258_vm2, %v225_v5  ;;  %4690 = vmatprep.subr.msk.mxu1 %vm355_vm1, %v223_v6  ;;  %v4172_v12 = vld [vmem:[%s6457_s1 + $0x18] sm:$0xf]  ;;  %v5565_v14 = vld [vmem:[%s5504_s26 + $0x61] sm:$0xff]  ;;  %v5576_v15 = vld [vmem:[%s5504_s26 + $0x69] sm:$0xff] }
  0x22   : > { %4843 = vmatmul.mubr.msk.f32.vlgmr.msra.gmra.mrb[0].mxu0 %vm258_vm2, %v4009_v7  ;;  %4890 = vmatprep.subr.msk.mxu0 %vm355_vm1, %v4106_v8  ;;  %v5561_v13 = vld [vmem:[%s5504_s26 + $0x51] sm:$0xff]  ;;  %v5579_v16 = vld [vmem:[%s5504_s26 + $0x79] sm:$0xff]  ;;  %v5590_v17 = vld [vmem:[%s5504_s26 + $0x81] sm:$0xff] }
  0x23   : > { %4691 = vmatpush3.msk.msra.mxu1 %vm355_vm1, %v223_v6  ;;  %4891 = vmatpush3.msk.msra.mxu0 %vm355_vm1, %v4106_v8  ;;  %v5595_v18 = vld [vmem:[%s6457_s1 + $0x8] sm:$0xf]  ;;  %v5598_v19 = vld [vmem:[%s5504_s26 + $0x91] sm:$0xff]  ;;  %v5611_v20 = vld [vmem:[%s5504_s26 + $0x99] sm:$0xff] }
  0x24   : > { %4645 = vmatprep.mubr.msk.f32.mxu1 %vm258_vm2, %v4008_v4  ;;  %4845 = vmatprep.mubr.msk.f32.mxu0 %vm258_vm2, %v5535_v9  ;;  %v5614_v21 = vld [vmem:[%s5504_s26 + $0xa9] sm:$0xff]  ;;  %v5625_v22 = vld [vmem:[%s5504_s26 + $0xb1] sm:$0xff]  ;;  %v5628_v23 = vld [vmem:[%s5504_s26 + $0xc1] sm:$0xff] }
  0x25   : > { %4646 = vmatmul.mubr.msk.f32.gmra.mrb[2].mxu1 %vm258_vm2, %v4009_v7  ;;  %4940 = vmatprep.subr.msk.mxu0 %vm355_vm1, %v4172_v12  ;;  %v5639_v24 = vld [vmem:[%s5504_s26 + $0xc9] sm:$0xff]  ;;  %v5642_v25 = vld [vmem:[%s5504_s26 + $0x1a] sm:$0xff]  ;;  %v5659_v28 = vld [vmem:[%s5504_s26 + $0x32] sm:$0xff] }
  0x26   : > { %4846 = vmatmul.mubr.msk.f32.gmra.mrb[2].mxu0 %vm258_vm2, %v5542_v10  ;;  %4648 = vmatprep.mubr.msk.f32.mxu1 %vm258_vm2, %v5535_v9  ;;  %v5653_v26 = vld [vmem:[%s5504_s26 + $0x22] sm:$0xff]  ;;  %v5656_v27 = vld [vmem:[%s5504_s26 + $0xd9] sm:$0xff]  ;;  %v5682_v32 = vld [vmem:[%s5504_s26 + $0xf1] sm:$0xff] }
  0x27   : > { %4848 = vmatprep.mubr.msk.f32.mxu0 %vm258_vm2, %v5548_v11  ;;  %4740 = vmatprep.subr.msk.mxu1 %vm355_vm1, %v5595_v18  ;;  %v5666_v29 = vld [vmem:[%s6457_s1 + $0x1c] sm:$0xf]  ;;  %v5673_v30 = vld [vmem:[%s5504_s26 + $0xe1] sm:$0xff]  ;;  %6506 = vst [vmem:[#allocation4_spill] sm:$0xff] %v5682_v32  ;;  %v5685_v33 = vld [vmem:[%s5504_s26 + $0x4a] sm:$0xff] }
  0x28   : > { %6505 = vst [vmem:[#allocation3_spill] sm:$0xff] %v5673_v30  ;;  %v5679_v31 = vld [vmem:[%s5504_s26 + $0x3a] sm:$0xff]  ;;  %v5701_v35 = vld [vmem:[%s5504_s26 + $0x52] sm:$0xff]  ;;  %v5704_v36 = vld [vmem:[%s5504_s26 + $0x109] sm:$0xff] }
  0x29   : > { %4649 = vmatmul.mubr.msk.f32.gmra.mrb[4].mxu1 %vm258_vm2, %v5542_v10  ;;  %v5696_v34 = vld [vmem:[%s5504_s26 + $0xf9] sm:$0xff]  ;;  %6508 = vst [vmem:[#allocation6_spill] sm:$0xff] %v5704_v36  ;;  %v5707_v37 = vld [vmem:[%s5504_s26 + $0x62] sm:$0xff]  ;;  %v5716_v38 = vld [vmem:[%s5504_s26 + $0x111] sm:$0xff] }
  0x2a   : > { %4849 = vmatmul.mubr.msk.f32.gmra.mrb[4].mxu0 %vm258_vm2, %v5561_v13  ;;  %4651 = vmatprep.mubr.msk.f32.mxu1 %vm258_vm2, %v5548_v11  ;;  %6507 = vst [vmem:[#allocation5_spill] sm:$0xff] %v5696_v34  ;;  %6509 = vst [vmem:[#allocation7_spill] sm:$0xff] %v5716_v38  ;;  %v5721_v39 = vld [vmem:[%s5504_s26 + $0x6a] sm:$0xff]  ;;  %v5724_v40 = vld [vmem:[%s5504_s26 + $0x121] sm:$0xff] }
  0x2b   : > { %4851 = vmatprep.mubr.msk.f32.mxu0 %vm258_vm2, %v5565_v14  ;;  %6510 = vst [vmem:[#allocation8_spill] sm:$0xff] %v5724_v40  ;;  %v5727_v41 = vld [vmem:[%s5504_s26 + $0x7a] sm:$0xff]  ;;  %v5736_v42 = vld [vmem:[%s5504_s26 + $0x129] sm:$0xff]  ;;  %v5747_v45 = vld [vmem:[%s5504_s26 + $0x92] sm:$0xff] }
  0x2c   : > { %6511 = vst [vmem:[#allocation9_spill] sm:$0xff] %v5736_v42  ;;  %v5741_v43 = vld [vmem:[%s5504_s26 + $0x82] sm:$0xff]  ;;  %v5744_v44 = vld [vmem:[%s5504_s26 + $0x139] sm:$0xff]  ;;  %v5764_v48 = vld [vmem:[%s5504_s26 + $0x151] sm:$0xff] }
  0x2d   : > { %4652 = vmatmul.mubr.msk.f32.gmra.mrb[6].mxu1 %vm258_vm2, %v5561_v13  ;;  %6512 = vst [vmem:[#allocation10_spill] sm:$0xff] %v5744_v44  ;;  %v5756_v46 = vld [vmem:[%s5504_s26 + $0x141] sm:$0xff]  ;;  %6514 = vst [vmem:[#allocation12_spill] sm:$0xff] %v5764_v48  ;;  %v5767_v49 = vld [vmem:[%s5504_s26 + $0xaa] sm:$0xff] }
  0x2e   : > { %4852 = vmatmul.mubr.msk.f32.gmra.mrb[6].mxu0 %vm258_vm2, %v5576_v15  ;;  %4654 = vmatprep.mubr.msk.f32.mxu1 %vm258_vm2, %v5565_v14  ;;  %6513 = vst [vmem:[#allocation11_spill] sm:$0xff] %v5756_v46  ;;  %v5761_v47 = vld [vmem:[%s5504_s26 + $0x9a] sm:$0xff]  ;;  %v5781_v51 = vld [vmem:[%s5504_s26 + $0xb2] sm:$0xff]  ;;  %v5784_v52 = vld [vmem:[%s5504_s26 + $0x169] sm:$0xff] }
  0x2f   : > { %4854 = vmatprep.mubr.msk.f32.mxu0 %vm258_vm2, %v5579_v16  ;;  %v5776_v50 = vld [vmem:[%s5504_s26 + $0x159] sm:$0xff]  ;;  %6516 = vst [vmem:[#allocation14_spill] sm:$0xff] %v5784_v52  ;;  %v5787_v53 = vld [vmem:[%s5504_s26 + $0xc2] sm:$0xff]  ;;  %v5796_v54 = vld [vmem:[%s5504_s26 + $0x171] sm:$0xff] }
  0x30   : > { %6515 = vst [vmem:[#allocation13_spill] sm:$0xff] %v5776_v50  ;;  %6517 = vst [vmem:[#allocation15_spill] sm:$0xff] %v5796_v54  ;;  %v5801_v55 = vld [vmem:[%s5504_s26 + $0xca] sm:$0xff]  ;;  %v191_v56 = vld [vmem:[%s5504_s26] sm:$0xff] }
  0x31   : > { %4655 = vmatmul.mubr.msk.f32.gmra.mrb[8].mxu1 %vm258_vm2, %v5576_v15  ;;  %v5805_v57 = vld [vmem:[%s5504_s26 + $0xda] sm:$0xff]  ;;  %v192_v58 = vld [vmem:[%s5504_s26 + $0x8] sm:$0xff]  ;;  %v5822_v61 = vld [vmem:[%s5504_s26 + $0xf2] sm:$0xff] }
  0x32   : > { %4855 = vmatmul.mubr.msk.f32.gmra.mrb[8].mxu0 %vm258_vm2, %v5590_v17  ;;  %4657 = vmatprep.mubr.msk.f32.mxu1 %vm258_vm2, %v5579_v16  ;;  %v5816_v59 = vld [vmem:[%s5504_s26 + $0xe2] sm:$0xff]  ;;  %v5819_v60 = vld [vmem:[%s5504_s26 + $0x18] sm:$0xff]  ;;  %v5828_v62 = vld [vmem:[%s6457_s1 + $0xc] sm:$0xf] }
  0x33   : > { %4857 = vmatprep.mubr.msk.f32.mxu0 %vm258_vm2, %v5598_v19  ;;  %6518 = vst [vmem:[#allocation16_spill] sm:$0xff] %v5819_v60  ;;  %v5835_v63 = vld [vmem:[%s5504_s26 + $0x20] sm:$0xff]  ;;  %v5845_v1 = vld [vmem:[%s5504_s26 + $0x30] sm:$0xff]  ;;  %v5859_v4 = vld [vmem:[%s5504_s26 + $0x38] sm:$0xff] }
  0x34   : > { %6519 = vst [vmem:[#allocation17_spill] sm:$0xff] %v5835_v63  ;;  %v5842_v0 = vld [vmem:[%s5504_s26 + $0xfa] sm:$0xff]  ;;  %6520 = vst [vmem:[#allocation18_spill] sm:$0xff] %v5845_v1  ;;  %v5848_v3 = vld [vmem:[%s5504_s26 + $0x10a] sm:$0xff] }
  0x35   : > { %4658 = vmatmul.mubr.msk.f32.gmra.mrb[10].mxu1 %vm258_vm2, %v5590_v17  ;;  %6521 = vst [vmem:[#allocation19_spill] sm:$0xff] %v5859_v4  ;;  %v5864_v5 = vld [vmem:[%s5504_s26 + $0x112] sm:$0xff]  ;;  %v5867_v6 = vld [vmem:[%s5504_s26 + $0x48] sm:$0xff] }
  0x36   : > { %4858 = vmatmul.mubr.msk.f32.gmra.mrb[10].mxu0 %vm258_vm2, %v5611_v20  ;;  %4660 = vmatprep.mubr.msk.f32.mxu1 %vm258_vm2, %v5598_v19  ;;  %6522 = vst [vmem:[#allocation20_spill] sm:$0xff] %v5867_v6  ;;  %v5870_v7 = vld [vmem:[%s5504_s26 + $0x122] sm:$0xff]  ;;  %v5879_v8 = vld [vmem:[%s5504_s26 + $0x50] sm:$0xff] }
  0x37   : > { %4860 = vmatprep.mubr.msk.f32.mxu0 %vm258_vm2, %v5614_v21  ;;  %6523 = vst [vmem:[#allocation21_spill] sm:$0xff] %v5879_v8 }
  0x39   : > { %4661 = vmatmul.mubr.msk.f32.gmra.mrb[12].mxu1 %vm258_vm2, %v5611_v20 }
  0x3a   : > { %4861 = vmatmul.mubr.msk.f32.gmra.mrb[12].mxu0 %vm258_vm2, %v5625_v22  ;;  %4663 = vmatprep.mubr.msk.f32.mxu1 %vm258_vm2, %v5614_v21 }
  0x3b   : > { %4863 = vmatprep.mubr.msk.f32.mxu0 %vm258_vm2, %v5628_v23 }
  0x3d   : > { %4664 = vmatmul.mubr.msk.f32.gmra.mrb[14].mxu1 %vm258_vm2, %v5625_v22 }
  0x3e   : > { %4864 = vmatmul.mubr.msk.f32.gmra.mrb[14].mxu0 %vm258_vm2, %v5639_v24  ;;  %4666 = vmatprep.mubr.msk.f32.mxu1 %vm258_vm2, %v5628_v23 }
  0x3f   : > { %4892 = vmatprep.mubr.msk.f32.mxu0 %vm258_vm2, %v5642_v25 }
  0x41   : > { %4667 = vmatmul.mubr.msk.f32.gmra.mrb[16].mxu1 %vm258_vm2, %v5639_v24 }
  0x42   : > { %4893 = vmatmul.mubr.msk.f32.vlgmr.msra.gmra.mrb[0].mxu0 %vm258_vm2, %v5653_v26  ;;  %4669 = vmatprep.mubr.msk.f32.mxu1 %vm258_vm2, %v5656_v27 }
  0x43   : > { %4941 = vmatpush3.msk.msra.mxu0 %vm355_vm1, %v4172_v12  ;;  %4895 = vmatprep.mubr.msk.f32.mxu0 %vm258_vm2, %v5659_v28  ;;  %v5884_v12 = vld [vmem:[%s5504_s26 + $0x12a] sm:$0xff] }
  0x44   : > { %4990 = vmatprep.subr.msk.mxu0 %vm355_vm1, %v5666_v29 }
  0x45   : > { %4670 = vmatmul.mubr.msk.f32.gmra.mrb[18].mxu1 %vm258_vm2, %v5673_v30  ;;  %v5976_v30 = vld [vmem:[%s5504_s26 + $0xc8] sm:$0xff] }
  0x46   : > { %4896 = vmatmul.mubr.msk.f32.gmra.mrb[2].mxu0 %vm258_vm2, %v5679_v31  ;;  %4672 = vmatprep.mubr.msk.f32.mxu1 %vm258_vm2, %v5682_v32  ;;  %v5964_v32 = vld [vmem:[%s5504_s26 + $0x18a] sm:$0xff] }
  0x47   : > { %4898 = vmatprep.mubr.msk.f32.mxu0 %vm258_vm2, %v5685_v33  ;;  %6534 = vst [vmem:[#allocation32_spill] sm:$0xff] %v5964_v32 }
  0x49   : > { %4673 = vmatmul.mubr.msk.f32.gmra.mrb[20].mxu1 %vm258_vm2, %v5696_v34  ;;  %v5950_v34 = vld [vmem:[%s5504_s26 + $0x182] sm:$0xff] }
  0x4a   : > { %4899 = vmatmul.mubr.msk.f32.gmra.mrb[4].mxu0 %vm258_vm2, %v5701_v35  ;;  %4675 = vmatprep.mubr.msk.f32.mxu1 %vm258_vm2, %v5704_v36  ;;  %v5947_v36 = vld [vmem:[%s5504_s26 + $0xa8] sm:$0xff]  ;;  %6532 = vst [vmem:[#allocation30_spill] sm:$0xff] %v5950_v34 }
  0x4b   : > { %4901 = vmatprep.mubr.msk.f32.mxu0 %vm258_vm2, %v5707_v37  ;;  %6531 = vst [vmem:[#allocation29_spill] sm:$0xff] %v5947_v36 }
  0x4d   : > { %4676 = vmatmul.mubr.msk.f32.gmra.mrb[22].mxu1 %vm258_vm2, %v5716_v38  ;;  %v5944_v38 = vld [vmem:[%s5504_s26 + $0x172] sm:$0xff] }
  0x4e   : > { %4902 = vmatmul.mubr.msk.f32.gmra.mrb[6].mxu0 %vm258_vm2, %v5721_v39  ;;  %4678 = vmatprep.mubr.msk.f32.mxu1 %vm258_vm2, %v5724_v40  ;;  %v5939_v40 = vld [vmem:[%s5504_s26 + $0x98] sm:$0xff]  ;;  %6530 = vst [vmem:[#allocation28_spill] sm:$0xff] %v5944_v38 }
  0x4f   : > { %4904 = vmatprep.mubr.msk.f32.mxu0 %vm258_vm2, %v5727_v41  ;;  %6529 = vst [vmem:[#allocation27_spill] sm:$0xff] %v5939_v40 }
  0x51   : > { %4679 = vmatmul.mubr.msk.f32.gmra.mrb[24].mxu1 %vm258_vm2, %v5736_v42  ;;  %v5930_v42 = vld [vmem:[%s5504_s26 + $0x16a] sm:$0xff] }
  0x52   : > { %4905 = vmatmul.mubr.msk.f32.gmra.mrb[8].mxu0 %vm258_vm2, %v5741_v43  ;;  %4681 = vmatprep.mubr.msk.f32.mxu1 %vm258_vm2, %v5744_v44  ;;  %v5927_v44 = vld [vmem:[%s5504_s26 + $0x90] sm:$0xff] }
  0x53   : > { %4907 = vmatprep.mubr.msk.f32.mxu0 %vm258_vm2, %v5747_v45  ;;  %6528 = vst [vmem:[#allocation26_spill] sm:$0xff] %v5927_v44 }
  0x55   : > { %4682 = vmatmul.mubr.msk.f32.gmra.mrb[26].mxu1 %vm258_vm2, %v5756_v46  ;;  %v5924_v46 = vld [vmem:[%s5504_s26 + $0x15a] sm:$0xff] }
  0x56   : > { %4908 = vmatmul.mubr.msk.f32.gmra.mrb[10].mxu0 %vm258_vm2, %v5761_v47  ;;  %4684 = vmatprep.mubr.msk.f32.mxu1 %vm258_vm2, %v5764_v48  ;;  %v5919_v48 = vld [vmem:[%s5504_s26 + $0x80] sm:$0xff] }
  0x57   : > { %4910 = vmatprep.mubr.msk.f32.mxu0 %vm258_vm2, %v5767_v49  ;;  %6527 = vst [vmem:[#allocation25_spill] sm:$0xff] %v5919_v48 }
  0x59   : > { %4685 = vmatmul.mubr.msk.f32.gmra.mrb[28].mxu1 %vm258_vm2, %v5776_v50  ;;  %v5910_v50 = vld [vmem:[%s5504_s26 + $0x152] sm:$0xff] }
  0x5a   : > { %4911 = vmatmul.mubr.msk.f32.gmra.mrb[12].mxu0 %vm258_vm2, %v5781_v51  ;;  %4687 = vmatprep.mubr.msk.f32.mxu1 %vm258_vm2, %v5784_v52  ;;  %v5907_v52 = vld [vmem:[%s5504_s26 + $0x78] sm:$0xff] }
  0x5b   : > { %4913 = vmatprep.mubr.msk.f32.mxu0 %vm258_vm2, %v5787_v53  ;;  %6526 = vst [vmem:[#allocation24_spill] sm:$0xff] %v5907_v52 }
  0x5d   : > { %4688 = vmatmul.mubr.msk.f32.gmra.mrb[30].mxu1 %vm258_vm2, %v5796_v54  ;;  %v5904_v54 = vld [vmem:[%s5504_s26 + $0x142] sm:$0xff] }
  0x5e   : > { %4914 = vmatmul.mubr.msk.f32.gmra.mrb[14].mxu0 %vm258_vm2, %v5801_v55  ;;  %4692 = vmatprep.mubr.msk.f32.mxu1 %vm258_vm2, %v191_v56  ;;  %v5890_v56 = vld [vmem:[%s5504_s26 + $0x13a] sm:$0xff] }
  0x5f   : > { %4916 = vmatprep.mubr.msk.f32.mxu0 %vm258_vm2, %v5805_v57 }
  0x61   : > { %4693 = vmatmul.mubr.msk.f32.vlgmr.msra.gmra.mrb[0].mxu1 %vm258_vm2, %v192_v58  ;;  %v5899_v58 = vld [vmem:[%s5504_s26 + $0x68] sm:$0xff] }
  0x62   : > { %4917 = vmatmul.mubr.msk.f32.gmra.mrb[16].mxu0 %vm258_vm2, %v5816_v59  ;;  %4741 = vmatpush3.msk.msra.mxu1 %vm355_vm1, %v5595_v18  ;;  %v5887_v18 = vld [vmem:[%s5504_s26 + $0x60] sm:$0xff]  ;;  %6525 = vst [vmem:[#allocation23_spill] sm:$0xff] %v5899_v58 }
  0x63   : > { %4695 = vmatprep.mubr.msk.f32.mxu1 %vm258_vm2, %v5819_v60  ;;  %4919 = vmatprep.mubr.msk.f32.mxu0 %vm258_vm2, %v5822_v61  ;;  %6524 = vst [vmem:[#allocation22_spill] sm:$0xff] %v5887_v18  ;;  %v5967_v60 = vld [vmem:[%s5504_s26 + $0xc0] sm:$0xff] }
  0x64   : > { %4790 = vmatprep.subr.msk.mxu1 %vm355_vm1, %v5828_v62  ;;  %6535 = vst [vmem:[#allocation33_spill] sm:$0xff] %v5967_v60 }
  0x65   : > { %4696 = vmatmul.mubr.msk.f32.gmra.mrb[2].mxu1 %vm258_vm2, %v5835_v63  ;;  %v5959_v63 = vld [vmem:[%s5504_s26 + $0xb0] sm:$0xff] }
  0x66   : > { %4920 = vmatmul.mubr.msk.f32.gmra.mrb[18].mxu0 %vm258_vm2, %v5842_v0  ;;  %4698 = vmatprep.mubr.msk.f32.mxu1 %vm258_vm2, %v5845_v1  ;;  %6533 = vst [vmem:[#allocation31_spill] sm:$0xff] %v5959_v63 }
  0x67   : > { %4922 = vmatprep.mubr.msk.f32.mxu0 %vm258_vm2, %v5848_v3 }
  0x69   : > { %4699 = vmatmul.mubr.msk.f32.gmra.mrb[4].mxu1 %vm258_vm2, %v5859_v4 }
  0x6a   : > { %4923 = vmatmul.mubr.msk.f32.gmra.mrb[20].mxu0 %vm258_vm2, %v5864_v5  ;;  %4701 = vmatprep.mubr.msk.f32.mxu1 %vm258_vm2, %v5867_v6 }
  0x6b   : > { %4925 = vmatprep.mubr.msk.f32.mxu0 %vm258_vm2, %v5870_v7 }
  0x6d   : > { %4702 = vmatmul.mubr.msk.f32.gmra.mrb[6].mxu1 %vm258_vm2, %v5879_v8 }
  0x6e   : > { %4926 = vmatmul.mubr.msk.f32.gmra.mrb[22].mxu0 %vm258_vm2, %v5884_v12  ;;  %4704 = vmatprep.mubr.msk.f32.mxu1 %vm258_vm2, %v5887_v18 }
  0x6f   : > { %4928 = vmatprep.mubr.msk.f32.mxu0 %vm258_vm2, %v5890_v56 }
  0x71   : > { %4705 = vmatmul.mubr.msk.f32.gmra.mrb[8].mxu1 %vm258_vm2, %v5899_v58 }
  0x72   : > { %4929 = vmatmul.mubr.msk.f32.gmra.mrb[24].mxu0 %vm258_vm2, %v5904_v54  ;;  %4707 = vmatprep.mubr.msk.f32.mxu1 %vm258_vm2, %v5907_v52 }
  0x73   : > { %4931 = vmatprep.mubr.msk.f32.mxu0 %vm258_vm2, %v5910_v50 }
  0x75   : > { %4708 = vmatmul.mubr.msk.f32.gmra.mrb[10].mxu1 %vm258_vm2, %v5919_v48 }
  0x76   : > { %4932 = vmatmul.mubr.msk.f32.gmra.mrb[26].mxu0 %vm258_vm2, %v5924_v46  ;;  %4710 = vmatprep.mubr.msk.f32.mxu1 %vm258_vm2, %v5927_v44 }
  0x77   : > { %4934 = vmatprep.mubr.msk.f32.mxu0 %vm258_vm2, %v5930_v42 }
  0x79   : > { %4711 = vmatmul.mubr.msk.f32.gmra.mrb[12].mxu1 %vm258_vm2, %v5939_v40 }
  0x7a   : > { %4935 = vmatmul.mubr.msk.f32.gmra.mrb[28].mxu0 %vm258_vm2, %v5944_v38  ;;  %4713 = vmatprep.mubr.msk.f32.mxu1 %vm258_vm2, %v5947_v36  ;;  %v5988_v38 = vld [vmem:[%s6457_s1 + $0x20] sm:$0xf] }
  0x7b   : > { %4937 = vmatprep.mubr.msk.f32.mxu0 %vm258_vm2, %v5950_v34  ;;  %v5981_v34 = vld [vmem:[%s5504_s26 + $0xd8] sm:$0xff] }
  0x7d   : > { %4714 = vmatmul.mubr.msk.f32.gmra.mrb[14].mxu1 %vm258_vm2, %v5959_v63 }
  0x7e   : > { %4938 = vmatmul.mubr.msk.f32.gmra.mrb[30].mxu0 %vm258_vm2, %v5964_v32  ;;  %4716 = vmatprep.mubr.msk.f32.mxu1 %vm258_vm2, %v5967_v60  ;;  %v5995_v32 = vld [vmem:[%s5504_s26 + $0xe0] sm:$0xff] }
  0x7f   : > { %4942 = vmatprep.mubr.msk.f32.mxu0 %vm258_vm2, %v5845_v1  ;;  %v6002_v1 = vld [vmem:[%s5504_s26 + $0xf0] sm:$0xff] }
  0x81   : > { %4717 = vmatmul.mubr.msk.f32.gmra.mrb[16].mxu1 %vm258_vm2, %v5976_v30 }
  0x82   : > { %4943 = vmatmul.mubr.msk.f32.vlgmr.msra.gmra.mrb[0].mxu0 %vm258_vm2, %v5859_v4  ;;  %4719 = vmatprep.mubr.msk.f32.mxu1 %vm258_vm2, %v5981_v34  ;;  %v6032_v4 = vld [vmem:[%s5504_s26 + $0x120] sm:$0xff] }
  0x83   : > { %4991 = vmatpush3.msk.msra.mxu0 %vm355_vm1, %v5666_v29  ;;  %4945 = vmatprep.mubr.msk.f32.mxu0 %vm258_vm2, %v5867_v6  ;;  %v6013_v29 = vld [vmem:[%s5504_s26 + $0xf8] sm:$0xff]  ;;  %v6018_v6 = vld [vmem:[%s5504_s26 + $0x108] sm:$0xff] }
  0x84   : > { %5040 = vmatprep.subr.msk.mxu0 %vm355_vm1, %v5988_v38 }
  0x85   : > { %4720 = vmatmul.mubr.msk.f32.gmra.mrb[18].mxu1 %vm258_vm2, %v5995_v32 }
  0x86   : > { %4946 = vmatmul.mubr.msk.f32.gmra.mrb[2].mxu0 %vm258_vm2, %v5879_v8  ;;  %4722 = vmatprep.mubr.msk.f32.mxu1 %vm258_vm2, %v6002_v1  ;;  %v6027_v8 = vld [vmem:[%s5504_s26 + $0x110] sm:$0xff] }
  0x87   : > { %4948 = vmatprep.mubr.msk.f32.mxu0 %vm258_vm2, %v5887_v18  ;;  %v6046_v18 = vld [vmem:[%s5504_s26 + $0x138] sm:$0xff] }
  0x89   : > { %4723 = vmatmul.mubr.msk.f32.gmra.mrb[20].mxu1 %vm258_vm2, %v6013_v29 }
  0x8a   : > { %4949 = vmatmul.mubr.msk.f32.gmra.mrb[4].mxu0 %vm258_vm2, %v5899_v58  ;;  %4725 = vmatprep.mubr.msk.f32.mxu1 %vm258_vm2, %v6018_v6  ;;  %v6041_v58 = vld [vmem:[%s5504_s26 + $0x128] sm:$0xff] }
  0x8b   : > { %4951 = vmatprep.mubr.msk.f32.mxu0 %vm258_vm2, %v5907_v52  ;;  %v6060_v52 = vld [vmem:[%s5504_s26 + $0x150] sm:$0xff] }
  0x8d   : > { %4726 = vmatmul.mubr.msk.f32.gmra.mrb[22].mxu1 %vm258_vm2, %v6027_v8 }
  0x8e   : > { %4952 = vmatmul.mubr.msk.f32.gmra.mrb[6].mxu0 %vm258_vm2, %v5919_v48  ;;  %4728 = vmatprep.mubr.msk.f32.mxu1 %vm258_vm2, %v6032_v4  ;;  %v6055_v48 = vld [vmem:[%s5504_s26 + $0x140] sm:$0xff] }
  0x8f   : > { %4954 = vmatprep.mubr.msk.f32.mxu0 %vm258_vm2, %v5927_v44  ;;  %v6074_v44 = vld [vmem:[%s5504_s26 + $0x168] sm:$0xff] }
  0x91   : > { %4729 = vmatmul.mubr.msk.f32.gmra.mrb[24].mxu1 %vm258_vm2, %v6041_v58 }
  0x92   : > { %4955 = vmatmul.mubr.msk.f32.gmra.mrb[8].mxu0 %vm258_vm2, %v5939_v40  ;;  %4731 = vmatprep.mubr.msk.f32.mxu1 %vm258_vm2, %v6046_v18  ;;  %v6069_v40 = vld [vmem:[%s5504_s26 + $0x158] sm:$0xff] }
  0x93   : > { %4957 = vmatprep.mubr.msk.f32.mxu0 %vm258_vm2, %v5947_v36  ;;  %v908_v36 = vld [vmem:[%s5504_s26 + $0x2] sm:$0xff] }
  0x95   : > { %4732 = vmatmul.mubr.msk.f32.gmra.mrb[26].mxu1 %vm258_vm2, %v6055_v48 }
  0x96   : > { %4958 = vmatmul.mubr.msk.f32.gmra.mrb[10].mxu0 %vm258_vm2, %v5959_v63  ;;  %4734 = vmatprep.mubr.msk.f32.mxu1 %vm258_vm2, %v6060_v52  ;;  %v6083_v63 = vld [vmem:[%s5504_s26 + $0x170] sm:$0xff] }
  0x97   : > { %4960 = vmatprep.mubr.msk.f32.mxu0 %vm258_vm2, %v5967_v60  ;;  %v909_v60 = vld [vmem:[%s5504_s26 + $0xa] sm:$0xff] }
  0x99   : > { %4735 = vmatmul.mubr.msk.f32.gmra.mrb[28].mxu1 %vm258_vm2, %v6069_v40 }
  0x9a   : > { %4961 = vmatmul.mubr.msk.f32.gmra.mrb[12].mxu0 %vm258_vm2, %v5976_v30  ;;  %4737 = vmatprep.mubr.msk.f32.mxu1 %vm258_vm2, %v6074_v44 }
  0x9b   : > { %4963 = vmatprep.mubr.msk.f32.mxu0 %vm258_vm2, %v5981_v34 }
  0x9d   : > { %4738 = vmatmul.mubr.msk.f32.gmra.mrb[30].mxu1 %vm258_vm2, %v6083_v63 }
  0x9e   : > { %4964 = vmatmul.mubr.msk.f32.gmra.mrb[14].mxu0 %vm258_vm2, %v5995_v32  ;;  %4742 = vmatprep.mubr.msk.f32.mxu1 %vm258_vm2, %v908_v36  ;;  %v4170_v36 = vld [vmem:[%s5504_s26 + $0x198] sm:$0xff] }
  0x9f   : > { %4966 = vmatprep.mubr.msk.f32.mxu0 %vm258_vm2, %v6002_v1 }
  0xa1   : > { %4743 = vmatmul.mubr.msk.f32.vlgmr.msra.gmra.mrb[0].mxu1 %vm258_vm2, %v909_v60  ;;  %v4171_v60 = vld [vmem:[%s5504_s26 + $0x1a0] sm:$0xff] }
  0xa2   : > { %4967 = vmatmul.mubr.msk.f32.gmra.mrb[16].mxu0 %vm258_vm2, %v6013_v29  ;;  %4791 = vmatpush3.msk.msra.mxu1 %vm355_vm1, %v5828_v62  ;;  %v6552_v62 = vld [vmem:[#allocation23_spill] sm:$0xff] }
  0xa3   : > { %4745 = vmatprep.mubr.msk.f32.mxu1 %vm258_vm2, %v5642_v25  ;;  %4969 = vmatprep.mubr.msk.f32.mxu0 %vm258_vm2, %v6018_v6  ;;  %v6140_v25 = vld [vmem:[%s5504_s26 + $0x180] sm:$0xff] }
  0xa4   : > { %5090 = vmatprep.subr.msk.mxu1 %vm355_vm1, %v5512_v2 }
  0xa5   : > { %4746 = vmatmul.mubr.msk.f32.gmra.mrb[2].mxu1 %vm258_vm2, %v5653_v26  ;;  %v6151_v26 = vld [vmem:[%s5504_s26 + $0x188] sm:$0xff] }
  0xa6   : > { %4970 = vmatmul.mubr.msk.f32.gmra.mrb[18].mxu0 %vm258_vm2, %v6027_v8  ;;  %4748 = vmatprep.mubr.msk.f32.mxu1 %vm258_vm2, %v5659_v28 }
  0xa7   : > { %4972 = vmatprep.mubr.msk.f32.mxu0 %vm258_vm2, %v6032_v4 }
  0xa9   : > { %4749 = vmatmul.mubr.msk.f32.gmra.mrb[4].mxu1 %vm258_vm2, %v5679_v31 }
  0xaa   : > { %4973 = vmatmul.mubr.msk.f32.gmra.mrb[20].mxu0 %vm258_vm2, %v6041_v58  ;;  %4751 = vmatprep.mubr.msk.f32.mxu1 %vm258_vm2, %v5685_v33 }
  0xab   : > { %4975 = vmatprep.mubr.msk.f32.mxu0 %vm258_vm2, %v6046_v18 }
  0xad   : > { %4752 = vmatmul.mubr.msk.f32.gmra.mrb[6].mxu1 %vm258_vm2, %v5701_v35 }
  0xae   : > { %4976 = vmatmul.mubr.msk.f32.gmra.mrb[22].mxu0 %vm258_vm2, %v6055_v48  ;;  %4754 = vmatprep.mubr.msk.f32.mxu1 %vm258_vm2, %v5707_v37 }
  0xaf   : > { %4978 = vmatprep.mubr.msk.f32.mxu0 %vm258_vm2, %v6060_v52 }
  0xb1   : > { %4755 = vmatmul.mubr.msk.f32.gmra.mrb[8].mxu1 %vm258_vm2, %v5721_v39 }
  0xb2   : > { %4979 = vmatmul.mubr.msk.f32.gmra.mrb[24].mxu0 %vm258_vm2, %v6069_v40  ;;  %4757 = vmatprep.mubr.msk.f32.mxu1 %vm258_vm2, %v5727_v41 }
  0xb3   : > { %4981 = vmatprep.mubr.msk.f32.mxu0 %vm258_vm2, %v6074_v44 }
  0xb5   : > { %4758 = vmatmul.mubr.msk.f32.gmra.mrb[10].mxu1 %vm258_vm2, %v5741_v43 }
  0xb6   : > { %4982 = vmatmul.mubr.msk.f32.gmra.mrb[26].mxu0 %vm258_vm2, %v6083_v63  ;;  %4760 = vmatprep.mubr.msk.f32.mxu1 %vm258_vm2, %v5747_v45 }
  0xb7   : > { %4984 = vmatprep.mubr.msk.f32.mxu0 %vm258_vm2, %v6140_v25 }
  0xb9   : > { %4761 = vmatmul.mubr.msk.f32.gmra.mrb[12].mxu1 %vm258_vm2, %v5761_v47 }
  0xba   : > { %4985 = vmatmul.mubr.msk.f32.gmra.mrb[28].mxu0 %vm258_vm2, %v6151_v26  ;;  %4763 = vmatprep.mubr.msk.f32.mxu1 %vm258_vm2, %v5767_v49 }
  0xbb   : > { %4987 = vmatprep.mubr.msk.f32.mxu0 %vm258_vm2, %v4170_v36  ;;  %v6553_v36 = vld [vmem:[#allocation11_spill] sm:$0xff] }
  0xbd   : > { %4764 = vmatmul.mubr.msk.f32.gmra.mrb[14].mxu1 %vm258_vm2, %v5781_v51 }
  0xbe   : > { %4988 = vmatmul.mubr.msk.f32.gmra.mrb[30].mxu0 %vm258_vm2, %v4171_v60  ;;  %4766 = vmatprep.mubr.msk.f32.mxu1 %vm258_vm2, %v5787_v53  ;;  %v6554_v60 = vld [vmem:[#allocation24_spill] sm:$0xff] }
  0xbf   : > { %4992 = vmatprep.mubr.msk.f32.mxu0 %vm258_vm2, %v5535_v9  ;;  %v6536_v9 = vld [vmem:[#allocation28_spill] sm:$0xff] }
  0xc1   : > { %4767 = vmatmul.mubr.msk.f32.gmra.mrb[16].mxu1 %vm258_vm2, %v5801_v55 }
  0xc2   : > { %4993 = vmatmul.mubr.msk.f32.vlgmr.msra.gmra.mrb[0].mxu0 %vm258_vm2, %v5542_v10  ;;  %4769 = vmatprep.mubr.msk.f32.mxu1 %vm258_vm2, %v5805_v57  ;;  %v6537_v10 = vld [vmem:[#allocation3_spill] sm:$0xff] }
  0xc3   : > { %5041 = vmatpush3.msk.msra.mxu0 %vm355_vm1, %v5988_v38  ;;  %4995 = vmatprep.mubr.msk.f32.mxu0 %vm258_vm2, %v5548_v11  ;;  %v6538_v11 = vld [vmem:[#allocation16_spill] sm:$0xff]  ;;  %v6551_v38 = vld [vmem:[#allocation10_spill] sm:$0xff] }
  0xc5   : > { %4770 = vmatmul.mubr.msk.f32.gmra.mrb[18].mxu1 %vm258_vm2, %v5816_v59 }
  0xc6   : > { %4996 = vmatmul.mubr.msk.f32.gmra.mrb[2].mxu0 %vm258_vm2, %v5561_v13  ;;  %4772 = vmatprep.mubr.msk.f32.mxu1 %vm258_vm2, %v5822_v61  ;;  %v6539_v13 = vld [vmem:[#allocation4_spill] sm:$0xff] }
  0xc7   : > { %4998 = vmatprep.mubr.msk.f32.mxu0 %vm258_vm2, %v5565_v14  ;;  %v6540_v14 = vld [vmem:[#allocation17_spill] sm:$0xff] }
  0xc9   : > { %4773 = vmatmul.mubr.msk.f32.gmra.mrb[20].mxu1 %vm258_vm2, %v5842_v0 }
  0xca   : > { %4999 = vmatmul.mubr.msk.f32.gmra.mrb[4].mxu0 %vm258_vm2, %v5576_v15  ;;  %4775 = vmatprep.mubr.msk.f32.mxu1 %vm258_vm2, %v5848_v3  ;;  %v6541_v15 = vld [vmem:[#allocation5_spill] sm:$0xff] }
  0xcb   : > { %5001 = vmatprep.mubr.msk.f32.mxu0 %vm258_vm2, %v5579_v16  ;;  %v6542_v16 = vld [vmem:[#allocation18_spill] sm:$0xff] }
  0xcd   : > { %4776 = vmatmul.mubr.msk.f32.gmra.mrb[22].mxu1 %vm258_vm2, %v5864_v5 }
  0xce   : > { %5002 = vmatmul.mubr.msk.f32.gmra.mrb[6].mxu0 %vm258_vm2, %v5590_v17  ;;  %4778 = vmatprep.mubr.msk.f32.mxu1 %vm258_vm2, %v5870_v7  ;;  %v6543_v17 = vld [vmem:[#allocation6_spill] sm:$0xff] }
  0xcf   : > { %5004 = vmatprep.mubr.msk.f32.mxu0 %vm258_vm2, %v5598_v19  ;;  %v6544_v19 = vld [vmem:[#allocation19_spill] sm:$0xff] }
  0xd1   : > { %4779 = vmatmul.mubr.msk.f32.gmra.mrb[24].mxu1 %vm258_vm2, %v5884_v12 }
  0xd2   : > { %5005 = vmatmul.mubr.msk.f32.gmra.mrb[8].mxu0 %vm258_vm2, %v5611_v20  ;;  %4781 = vmatprep.mubr.msk.f32.mxu1 %vm258_vm2, %v5890_v56  ;;  %v6545_v20 = vld [vmem:[#allocation7_spill] sm:$0xff] }
  0xd3   : > { %5007 = vmatprep.mubr.msk.f32.mxu0 %vm258_vm2, %v5614_v21  ;;  %v6546_v21 = vld [vmem:[#allocation20_spill] sm:$0xff] }
  0xd5   : > { %4782 = vmatmul.mubr.msk.f32.gmra.mrb[26].mxu1 %vm258_vm2, %v5904_v54 }
  0xd6   : > { %5008 = vmatmul.mubr.msk.f32.gmra.mrb[10].mxu0 %vm258_vm2, %v5625_v22  ;;  %4784 = vmatprep.mubr.msk.f32.mxu1 %vm258_vm2, %v5910_v50  ;;  %v6547_v22 = vld [vmem:[#allocation8_spill] sm:$0xff] }
  0xd7   : > { %5010 = vmatprep.mubr.msk.f32.mxu0 %vm258_vm2, %v5628_v23  ;;  %v6549_v23 = vld [vmem:[#allocation9_spill] sm:$0xff] }
  0xd9   : > { %4785 = vmatmul.mubr.msk.f32.gmra.mrb[28].mxu1 %vm258_vm2, %v5924_v46 }
  0xda   : > { %5011 = vmatmul.mubr.msk.f32.gmra.mrb[12].mxu0 %vm258_vm2, %v5639_v24  ;;  %4787 = vmatprep.mubr.msk.f32.mxu1 %vm258_vm2, %v5930_v42  ;;  %v6550_v24 = vld [vmem:[#allocation22_spill] sm:$0xff] }
  0xdb   : > { %5013 = vmatprep.mubr.msk.f32.mxu0 %vm258_vm2, %v5656_v27 }
  0xdd   : > { %4788 = vmatmul.mubr.msk.f32.gmra.mrb[30].mxu1 %vm258_vm2, %v6536_v9  ;;  %v6563_v9 = vld [vmem:[#allocation31_spill] sm:$0xff] }
  0xde   : > { %5014 = vmatmul.mubr.msk.f32.gmra.mrb[14].mxu0 %vm258_vm2, %v6537_v10  ;;  %4792 = vmatprep.mubr.msk.f32.mxu1 %vm258_vm2, %v6538_v11  ;;  %v6555_v11 = vld [vmem:[#allocation12_spill] sm:$0xff] }
  0xdf   : > { %5016 = vmatprep.mubr.msk.f32.mxu0 %vm258_vm2, %v6539_v13 }
  0xe1   : > { %4793 = vmatmul.mubr.msk.f32.vlgmr.msra.gmra.mrb[0].mxu1 %vm258_vm2, %v6540_v14  ;;  %v6556_v14 = vld [vmem:[#allocation25_spill] sm:$0xff] }
  0xe2   : > { %5017 = vmatmul.mubr.msk.f32.gmra.mrb[16].mxu0 %vm258_vm2, %v6541_v15  ;;  %5091 = vmatpush3.msk.msra.mxu1 %vm355_vm1, %v5512_v2  ;;  %v6548_v2 = vld [vmem:[#allocation21_spill] sm:$0xff] }
  0xe3   : > { %4795 = vmatprep.mubr.msk.f32.mxu1 %vm258_vm2, %v6542_v16  ;;  %5019 = vmatprep.mubr.msk.f32.mxu0 %vm258_vm2, %v6543_v17  ;;  %v6557_v16 = vld [vmem:[#allocation13_spill] sm:$0xff] }
  0xe5   : > { %4796 = vmatmul.mubr.msk.f32.gmra.mrb[2].mxu1 %vm258_vm2, %v6544_v19  ;;  %v6558_v19 = vld [vmem:[#allocation26_spill] sm:$0xff] }
  0xe6   : > { %5020 = vmatmul.mubr.msk.f32.gmra.mrb[18].mxu0 %vm258_vm2, %v6545_v20  ;;  %4798 = vmatprep.mubr.msk.f32.mxu1 %vm258_vm2, %v6546_v21  ;;  %v6559_v21 = vld [vmem:[#allocation14_spill] sm:$0xff] }
  0xe7   : > { %5022 = vmatprep.mubr.msk.f32.mxu0 %vm258_vm2, %v6547_v22 }
  0xe9   : > { %4799 = vmatmul.mubr.msk.f32.gmra.mrb[4].mxu1 %vm258_vm2, %v6548_v2  ;;  %v6278_v2 = vld [vmem:[%s5504_s26 + $0x181] sm:$0xff] }
  0xea   : > { %5023 = vmatmul.mubr.msk.f32.gmra.mrb[20].mxu0 %vm258_vm2, %v6549_v23  ;;  %4801 = vmatprep.mubr.msk.f32.mxu1 %vm258_vm2, %v6550_v24  ;;  %v6560_v24 = vld [vmem:[#allocation27_spill] sm:$0xff] }
  0xeb   : > { %5025 = vmatprep.mubr.msk.f32.mxu0 %vm258_vm2, %v6551_v38 }
  0xed   : > { %4802 = vmatmul.mubr.msk.f32.gmra.mrb[6].mxu1 %vm258_vm2, %v6552_v62  ;;  %v6561_v62 = vld [vmem:[#allocation15_spill] sm:$0xff] }
  0xee   : > { %5026 = vmatmul.mubr.msk.f32.gmra.mrb[22].mxu0 %vm258_vm2, %v6553_v36  ;;  %4804 = vmatprep.mubr.msk.f32.mxu1 %vm258_vm2, %v6554_v60  ;;  %v6562_v60 = vld [vmem:[#allocation29_spill] sm:$0xff] }
  0xef   : > { %5028 = vmatprep.mubr.msk.f32.mxu0 %vm258_vm2, %v6555_v11 }
  0xf1   : > { %4805 = vmatmul.mubr.msk.f32.gmra.mrb[8].mxu1 %vm258_vm2, %v6556_v14  ;;  %v6289_v14 = vld [vmem:[%s5504_s26 + $0x189] sm:$0xff] }
  0xf2   : > { %5029 = vmatmul.mubr.msk.f32.gmra.mrb[24].mxu0 %vm258_vm2, %v6557_v16  ;;  %4807 = vmatprep.mubr.msk.f32.mxu1 %vm258_vm2, %v6558_v19  ;;  %v4236_v19 = vld [vmem:[%s5504_s26 + $0x199] sm:$0xff] }
  0xf3   : > { %5031 = vmatprep.mubr.msk.f32.mxu0 %vm258_vm2, %v6559_v21  ;;  %v6564_v21 = vld [vmem:[#allocation33_spill] sm:$0xff] }
  0xf5   : > { %4808 = vmatmul.mubr.msk.f32.gmra.mrb[10].mxu1 %vm258_vm2, %v6560_v24  ;;  %v4237_v24 = vld [vmem:[%s5504_s26 + $0x1a1] sm:$0xff] }
  0xf6   : > { %5032 = vmatmul.mubr.msk.f32.gmra.mrb[26].mxu0 %vm258_vm2, %v6561_v62  ;;  %4810 = vmatprep.mubr.msk.f32.mxu1 %vm258_vm2, %v6562_v60 }
  0xf7   : > { %5034 = vmatprep.mubr.msk.f32.mxu0 %vm258_vm2, %v6278_v2 }
  0xf9   : > { %4811 = vmatmul.mubr.msk.f32.gmra.mrb[12].mxu1 %vm258_vm2, %v6563_v9 }
  0xfa   : > { %5035 = vmatmul.mubr.msk.f32.gmra.mrb[28].mxu0 %vm258_vm2, %v6289_v14  ;;  %4813 = vmatprep.mubr.msk.f32.mxu1 %vm258_vm2, %v6564_v21 }
  0xfb   : > { %5037 = vmatprep.mubr.msk.f32.mxu0 %vm258_vm2, %v4236_v19 }
  0xfd   : > { %4814 = vmatmul.mubr.msk.f32.gmra.mrb[14].mxu1 %vm258_vm2, %v5976_v30  ;;  %v6567_v30 = vld [vmem:[#allocation30_spill] sm:$0xff] }
  0xfe   : > { %5038 = vmatmul.mubr.msk.f32.gmra.mrb[30].mxu0 %vm258_vm2, %v4237_v24  ;;  %4816 = vmatprep.mubr.msk.f32.mxu1 %vm258_vm2, %v5981_v34 }
  0xff   : > { %5042 = vmatprep.mubr.msk.f32.mxu0 %vm258_vm2, %v5659_v28  ;;  %v6566_v28 = vld [vmem:[#allocation14_spill] sm:$0xff] }
 0x101   : > { %4817 = vmatmul.mubr.msk.f32.gmra.mrb[16].mxu1 %vm258_vm2, %v5995_v32  ;;  %v6568_v32 = vld [vmem:[#allocation32_spill] sm:$0xff] }
 0x102   : > { %5043 = vmatmul.mubr.msk.f32.vlgmr.msra.gmra.mrb[0].mxu0 %vm258_vm2, %v5679_v31  ;;  %4819 = vmatprep.mubr.msk.f32.mxu1 %vm258_vm2, %v6002_v1  ;;  %v4302_v31 = vld [vmem:[%s5504_s26 + $0x19a] sm:$0xff] }
 0x103   : > { %5045 = vmatprep.mubr.msk.f32.mxu0 %vm258_vm2, %v5685_v33  ;;  %v4303_v33 = vld [vmem:[%s5504_s26 + $0x1a2] sm:$0xff] }
 0x105   : > { %4820 = vmatmul.mubr.msk.f32.gmra.mrb[18].mxu1 %vm258_vm2, %v6013_v29 }
 0x106   : > { %5046 = vmatmul.mubr.msk.f32.gmra.mrb[2].mxu0 %vm258_vm2, %v5701_v35  ;;  %4822 = vmatprep.mubr.msk.f32.mxu1 %vm258_vm2, %v6018_v6 }
 0x107   : > { %5048 = vmatprep.mubr.msk.f32.mxu0 %vm258_vm2, %v5707_v37 }
 0x109   : > { %4823 = vmatmul.mubr.msk.f32.gmra.mrb[20].mxu1 %vm258_vm2, %v6027_v8 }
 0x10a   : > { %5049 = vmatmul.mubr.msk.f32.gmra.mrb[4].mxu0 %vm258_vm2, %v5721_v39  ;;  %4825 = vmatprep.mubr.msk.f32.mxu1 %vm258_vm2, %v6032_v4 }
 0x10b   : > { %5051 = vmatprep.mubr.msk.f32.mxu0 %vm258_vm2, %v5727_v41 }
 0x10d   : > { %4826 = vmatmul.mubr.msk.f32.gmra.mrb[22].mxu1 %vm258_vm2, %v6041_v58 }
 0x10e   : > { %5052 = vmatmul.mubr.msk.f32.gmra.mrb[6].mxu0 %vm258_vm2, %v5741_v43  ;;  %4828 = vmatprep.mubr.msk.f32.mxu1 %vm258_vm2, %v6046_v18 }
 0x10f   : > { %5054 = vmatprep.mubr.msk.f32.mxu0 %vm258_vm2, %v5747_v45 }
 0x111   : > { %4829 = vmatmul.mubr.msk.f32.gmra.mrb[24].mxu1 %vm258_vm2, %v6055_v48 }
 0x112   : > { %5055 = vmatmul.mubr.msk.f32.gmra.mrb[8].mxu0 %vm258_vm2, %v5761_v47  ;;  %4831 = vmatprep.mubr.msk.f32.mxu1 %vm258_vm2, %v6060_v52 }
 0x113   : > { %5057 = vmatprep.mubr.msk.f32.mxu0 %vm258_vm2, %v5767_v49 }
 0x115   : > { %4832 = vmatmul.mubr.msk.f32.gmra.mrb[26].mxu1 %vm258_vm2, %v6069_v40 }
 0x116   : > { %5058 = vmatmul.mubr.msk.f32.gmra.mrb[10].mxu0 %vm258_vm2, %v5781_v51  ;;  %4834 = vmatprep.mubr.msk.f32.mxu1 %vm258_vm2, %v6074_v44 }
 0x117   : > { %5060 = vmatprep.mubr.msk.f32.mxu0 %vm258_vm2, %v5787_v53 }
 0x119   : > { %4835 = vmatmul.mubr.msk.f32.gmra.mrb[28].mxu1 %vm258_vm2, %v6083_v63 }
 0x11a   : > { %5061 = vmatmul.mubr.msk.f32.gmra.mrb[12].mxu0 %vm258_vm2, %v5801_v55  ;;  %4837 = vmatprep.mubr.msk.f32.mxu1 %vm258_vm2, %v6140_v25 }
 0x11b   : > { %5063 = vmatprep.mubr.msk.f32.mxu0 %vm258_vm2, %v5805_v57 }
 0x11d   : > { %4838 = vmatmul.mubr.msk.f32.gmra.mrb[30].mxu1 %vm258_vm2, %v6151_v26 }
 0x11e   : > { %5064 = vmatmul.mubr.msk.f32.gmra.mrb[14].mxu0 %vm258_vm2, %v5816_v59  ;;  %4866 = vmatprep.mubr.msk.f32.mxu1 %vm258_vm2, %v5656_v27  ;;  %v6565_v27 = vld [vmem:[#allocation28_spill] sm:$0xff] }
 0x11f   : > { %5066 = vmatprep.mubr.msk.f32.mxu0 %vm258_vm2, %v5822_v61 }
 0x121   : > { %4867 = vmatmul.mubr.msk.f32.vlgmr.msra.gmra.mrb[16].mxu1 %vm258_vm2, %v6537_v10 }
 0x122   : > { %5067 = vmatmul.mubr.msk.f32.gmra.mrb[16].mxu0 %vm258_vm2, %v5842_v0  ;;  %4869 = vmatprep.mubr.msk.f32.mxu1 %vm258_vm2, %v6539_v13 }
 0x123   : > { %5069 = vmatprep.mubr.msk.f32.mxu0 %vm258_vm2, %v5848_v3 }
 0x125   : > { %4870 = vmatmul.mubr.msk.f32.gmra.mrb[18].mxu1 %vm258_vm2, %v6541_v15 }
 0x126   : > { %5070 = vmatmul.mubr.msk.f32.gmra.mrb[18].mxu0 %vm258_vm2, %v5864_v5  ;;  %4872 = vmatprep.mubr.msk.f32.mxu1 %vm258_vm2, %v6543_v17 }
 0x127   : > { %5072 = vmatprep.mubr.msk.f32.mxu0 %vm258_vm2, %v5870_v7 }
 0x129   : > { %4873 = vmatmul.mubr.msk.f32.gmra.mrb[20].mxu1 %vm258_vm2, %v6545_v20 }
 0x12a   : > { %5073 = vmatmul.mubr.msk.f32.gmra.mrb[20].mxu0 %vm258_vm2, %v5884_v12  ;;  %4875 = vmatprep.mubr.msk.f32.mxu1 %vm258_vm2, %v6547_v22 }
 0x12b   : > { %5075 = vmatprep.mubr.msk.f32.mxu0 %vm258_vm2, %v5890_v56 }
 0x12d   : > { %4876 = vmatmul.mubr.msk.f32.gmra.mrb[22].mxu1 %vm258_vm2, %v6549_v23 }
 0x12e   : > { %5076 = vmatmul.mubr.msk.f32.gmra.mrb[22].mxu0 %vm258_vm2, %v5904_v54  ;;  %4878 = vmatprep.mubr.msk.f32.mxu1 %vm258_vm2, %v6551_v38 }
 0x12f   : > { %5078 = vmatprep.mubr.msk.f32.mxu0 %vm258_vm2, %v5910_v50 }
 0x131   : > { %4879 = vmatmul.mubr.msk.f32.gmra.mrb[24].mxu1 %vm258_vm2, %v6553_v36 }
 0x132   : > { %5079 = vmatmul.mubr.msk.f32.gmra.mrb[24].mxu0 %vm258_vm2, %v5924_v46  ;;  %4881 = vmatprep.mubr.msk.f32.mxu1 %vm258_vm2, %v6555_v11 }
 0x133   : > { %5081 = vmatprep.mubr.msk.f32.mxu0 %vm258_vm2, %v5930_v42 }
 0x135   : > { %4882 = vmatmul.mubr.msk.f32.gmra.mrb[26].mxu1 %vm258_vm2, %v6557_v16 }
 0x136   : > { %5082 = vmatmul.mubr.msk.f32.gmra.mrb[26].mxu0 %vm258_vm2, %v6565_v27  ;;  %4884 = vmatprep.mubr.msk.f32.mxu1 %vm258_vm2, %v6566_v28 }
 0x137   : > { %5084 = vmatprep.mubr.msk.f32.mxu0 %vm258_vm2, %v6567_v30 }
 0x139   : > { %4885 = vmatmul.mubr.msk.f32.gmra.mrb[28].mxu1 %vm258_vm2, %v6561_v62 }
 0x13a   : > { %5085 = vmatmul.mubr.msk.f32.gmra.mrb[28].mxu0 %vm258_vm2, %v6568_v32  ;;  %4887 = vmatprep.mubr.msk.f32.mxu1 %vm258_vm2, %v6278_v2 }
 0x13b   : > { %5087 = vmatprep.mubr.msk.f32.mxu0 %vm258_vm2, %v4302_v31 }
 0x13d   : > { %4888 = vmatmul.mubr.msk.f32.gmra.mrb[30].mxu1 %vm258_vm2, %v6289_v14 }
 0x13e   : > { %5088 = vmatmul.mubr.msk.f32.gmra.mrb[30].mxu0 %vm258_vm2, %v4303_v33 }
 0x1b4   : > { %v4794_v34 = vpop.f32.mrb[0].mxu1 }
 0x1b5   : > { %v1498_v35 = vpop.f32.mrb[1].mxu1 }
 0x1b8   : > { %v4797_v37 = vpop.f32.mrb[2].mxu1 }
 0x1b9   : > { %v1508_v39 = vpop.f32.mrb[3].mxu1 }
 0x1bc   : > { %v4800_v40 = vpop.f32.mrb[4].mxu1 }
 0x1bd   : > { %v1518_v41 = vpop.f32.mrb[5].mxu1 }
 0x1c0   : > { %v4803_v42 = vpop.f32.mrb[6].mxu1 }
 0x1c1   : > { %v1528_v43 = vpop.f32.mrb[7].mxu1 }
 0x1c4   : > { %v4806_v44 = vpop.f32.mrb[8].mxu1 }
 0x1c5   : > { %v1538_v45 = vpop.f32.mrb[9].mxu1 }
 0x1c8   : > { %v4809_v46 = vpop.f32.mrb[10].mxu1 }
 0x1c9   : > { %v1548_v47 = vpop.f32.mrb[11].mxu1 }
 0x1cc   : > { %v4812_v48 = vpop.f32.mrb[12].mxu1 }
 0x1cd   : > { %v1558_v49 = vpop.f32.mrb[13].mxu1 }
 0x1d0   : > { %v4815_v50 = vpop.f32.mrb[14].mxu1 }
 0x1d1   : > { %v1568_v51 = vpop.f32.mrb[15].mxu1 }
 0x1d5   : > { %v5044_v52 = vpop.f32.mrb[0].mxu0 }
 0x1d6   : > { %v5092_v53 = vadd.f32 %v5044_v52, %v4794_v34  ;;  %v3449_v54 = vpop.f32.mrb[1].mxu0 }
 0x1d7   : > { %v5093_v55 = vadd.f32 %v3449_v54, %v1498_v35 }
 0x1d9   : > { %v5047_v57 = vpop.f32.mrb[2].mxu0  ;;  %3640 = vxpose.xlu0.b32.start [1/16] (narrow) %v5093_v55, 8 }
 0x1da   : > { %v5094_v59 = vadd.f32 %v5047_v57, %v4797_v37  ;;  %v3459_v61 = vpop.f32.mrb[3].mxu0 }
 0x1db   : > { %v5095_v63 = vadd.f32 %v3459_v61, %v1508_v39 }
 0x1dd   : > { %v5050_v0 = vpop.f32.mrb[4].mxu0  ;;  %3641 = vxpose.xlu0.b32.cont [2/16] (narrow) %v5092_v53, 8 }
 0x1de   : > { %v5096_v1 = vadd.f32 %v5050_v0, %v4800_v40  ;;  %v3469_v3 = vpop.f32.mrb[5].mxu0 }
 0x1df   : > { %v5097_v4 = vadd.f32 %v3469_v3, %v1518_v41 }
 0x1e1   : > { %v5053_v5 = vpop.f32.mrb[6].mxu0  ;;  %3642 = vxpose.xlu0.b32.cont [3/16] (narrow) %v5095_v63, 8 }
 0x1e2   : > { %v5098_v6 = vadd.f32 %v5053_v5, %v4803_v42  ;;  %v3479_v7 = vpop.f32.mrb[7].mxu0 }
 0x1e3   : > { %v5099_v8 = vadd.f32 %v3479_v7, %v1528_v43 }
 0x1e5   : > { %v5056_v12 = vpop.f32.mrb[8].mxu0  ;;  %3643 = vxpose.xlu0.b32.cont [4/16] (narrow) %v5094_v59, 8 }
 0x1e6   : > { %v5100_v18 = vadd.f32 %v5056_v12, %v4806_v44  ;;  %v3489_v56 = vpop.f32.mrb[9].mxu0 }
 0x1e7   : > { %v5101_v58 = vadd.f32 %v3489_v56, %v1538_v45 }
 0x1e9   : > { %v5059_v29 = vpop.f32.mrb[10].mxu0  ;;  %3644 = vxpose.xlu0.b32.cont [5/16] (narrow) %v5097_v4, 8 }
 0x1ea   : > { %v5102_v25 = vadd.f32 %v5059_v29, %v4809_v46  ;;  %v3499_v26 = vpop.f32.mrb[11].mxu0 }
 0x1eb   : > { %v5103_v9 = vadd.f32 %v3499_v26, %v1548_v47  ;;  %v3707_v26 = vld [vmem:[#allocation2] sm:$0xff] (!%p4338_p9) }
 0x1ed   : > { %v5062_v10 = vpop.f32.mrb[12].mxu0  ;;  %3645 = vxpose.xlu0.b32.cont [6/16] (narrow) %v5096_v1, 8 }
 0x1ee   : > { %v5104_v13 = vadd.f32 %v5062_v10, %v4812_v48  ;;  %v3509_v15 = vpop.f32.mrb[13].mxu0 }
 0x1ef   : > { %v5105_v17 = vadd.f32 %v3509_v15, %v1558_v49 }
 0x1f1   : > { %v5065_v20 = vpop.f32.mrb[14].mxu0  ;;  %3646 = vxpose.xlu0.b32.cont [7/16] (narrow) %v5099_v8, 8 }
 0x1f2   : > { %v6431_v22 = vadd.f32 %v5065_v20, %v4815_v50  ;;  %v3519_v23 = vpop.f32.mrb[15].mxu0 }
 0x1f3   : > { %v5107_v38 = vadd.f32 %v3519_v23, %v1568_v51 }
 0x1f4   : > { %v4868_v36 = vpop.f32.mrb[16].mxu1 }
 0x1f5   : > { %v5068_v11 = vpop.f32.mrb[16].mxu0  ;;  %3647 = vxpose.xlu0.b32.cont [8/16] (narrow) %v5098_v6, 8  ;;  %v1968_v16 = vpop.f32.mrb[17].mxu1 }
 0x1f6   : > { %v5108_v21 = vadd.f32 %v5068_v11, %v4868_v36  ;;  %v3529_v2 = vpop.f32.mrb[17].mxu0 }
 0x1f7   : > { %v5109_v62 = vadd.f32 %v3529_v2, %v1968_v16 }
 0x1f8   : > { %v4871_v60 = vpop.f32.mrb[18].mxu1 }
 0x1f9   : > { %v5071_v14 = vpop.f32.mrb[18].mxu0  ;;  %3648 = vxpose.xlu0.b32.cont [9/16] (narrow) %v5101_v58, 8  ;;  %3672 = vxpose.xlu1.b32.start [1/16] (narrow) %v5109_v62, 8  ;;  %v1978_v19 = vpop.f32.mrb[19].mxu1 }
 0x1fa   : > { %v5110_v24 = vadd.f32 %v5071_v14, %v4871_v60  ;;  %v3539_v27 = vpop.f32.mrb[19].mxu0 }
 0x1fb   : > { %v5111_v28 = vadd.f32 %v3539_v27, %v1978_v19 }
 0x1fc   : > { %v4874_v30 = vpop.f32.mrb[20].mxu1 }
 0x1fd   : > { %v5074_v31 = vpop.f32.mrb[20].mxu0  ;;  %3649 = vxpose.xlu0.b32.cont [10/16] (narrow) %v5100_v18, 8  ;;  %3673 = vxpose.xlu1.b32.cont [2/16] (narrow) %v5108_v21, 8  ;;  %v1988_v32 = vpop.f32.mrb[21].mxu1 }
 0x1fe   : > { %v5112_v33 = vadd.f32 %v5074_v31, %v4874_v30  ;;  %v3549_v34 = vpop.f32.mrb[21].mxu0 }
 0x1ff   : > { %v5113_v35 = vadd.f32 %v3549_v34, %v1988_v32 }
 0x200   : > { %v4877_v37 = vpop.f32.mrb[22].mxu1 }
 0x201   : > { %v5077_v39 = vpop.f32.mrb[22].mxu0  ;;  %3650 = vxpose.xlu0.b32.cont [11/16] (narrow) %v5103_v9, 8  ;;  %3674 = vxpose.xlu1.b32.cont [3/16] (narrow) %v5111_v28, 8  ;;  %v1998_v40 = vpop.f32.mrb[23].mxu1 }
 0x202   : > { %v5114_v41 = vadd.f32 %v5077_v39, %v4877_v37  ;;  %v3559_v42 = vpop.f32.mrb[23].mxu0 }
 0x203   : > { %v5115_v43 = vadd.f32 %v3559_v42, %v1998_v40 }
 0x204   : > { %v4880_v44 = vpop.f32.mrb[24].mxu1 }
 0x205   : > { %v5080_v45 = vpop.f32.mrb[24].mxu0  ;;  %3651 = vxpose.xlu0.b32.cont [12/16] (narrow) %v5102_v25, 8  ;;  %3675 = vxpose.xlu1.b32.cont [4/16] (narrow) %v5110_v24, 8  ;;  %v2008_v46 = vpop.f32.mrb[25].mxu1 }
 0x206   : > { %v5116_v47 = vadd.f32 %v5080_v45, %v4880_v44  ;;  %v3569_v48 = vpop.f32.mrb[25].mxu0 }
 0x207   : > { %v5117_v49 = vadd.f32 %v3569_v48, %v2008_v46 }
 0x208   : > { %v4883_v50 = vpop.f32.mrb[26].mxu1 }
 0x209   : > { %v5083_v51 = vpop.f32.mrb[26].mxu0  ;;  %3652 = vxpose.xlu0.b32.cont [13/16] (narrow) %v5105_v17, 8  ;;  %3676 = vxpose.xlu1.b32.cont [5/16] (narrow) %v5113_v35, 8  ;;  %v2018_v52 = vpop.f32.mrb[27].mxu1 }
 0x20a   : > { %v5118_v53 = vadd.f32 %v5083_v51, %v4883_v50  ;;  %v3579_v54 = vpop.f32.mrb[27].mxu0 }
 0x20b   : > { %v5119_v55 = vadd.f32 %v3579_v54, %v2018_v52 }
 0x20c   : > { %v4886_v57 = vpop.f32.mrb[28].mxu1 }
 0x20d   : > { %v5086_v59 = vpop.f32.mrb[28].mxu0  ;;  %3653 = vxpose.xlu0.b32.cont [14/16] (narrow) %v5104_v13, 8  ;;  %3677 = vxpose.xlu1.b32.cont [6/16] (narrow) %v5112_v33, 8  ;;  %v2028_v61 = vpop.f32.mrb[29].mxu1 }
 0x20e   : > { %v5120_v63 = vadd.f32 %v5086_v59, %v4886_v57  ;;  %v3589_v0 = vpop.f32.mrb[29].mxu0 }
 0x20f   : > { %v5121_v1 = vadd.f32 %v3589_v0, %v2028_v61 }
 0x210   : > { %v4889_v3 = vpop.f32.mrb[30].mxu1 }
 0x211   : > { %v5089_v4 = vpop.f32.mrb[30].mxu0  ;;  %3654 = vxpose.xlu0.b32.cont [15/16] (narrow) %v5107_v38, 8  ;;  %3678 = vxpose.xlu1.b32.cont [7/16] (narrow) %v5115_v43, 8  ;;  %v2038_v5 = vpop.f32.mrb[31].mxu1 }
 0x212   : > { %v5122_v6 = vadd.f32 %v5089_v4, %v4889_v3  ;;  %v3599_v7 = vpop.f32.mrb[31].mxu0 }
 0x213   : > { %v5123_v8 = vadd.f32 %v3599_v7, %v2038_v5 }
 0x215   : > { %3655 = vxpose.xlu0.b32.end [16/16] (narrow) %v6431_v22, 8  ;;  %3679 = vxpose.xlu1.b32.cont [8/16] (narrow) %v5114_v41, 8 }
 0x219   : > { %3680 = vxpose.xlu1.b32.cont [9/16] (narrow) %v5117_v49, 8 }
 0x21d   : > { %3681 = vxpose.xlu1.b32.cont [10/16] (narrow) %v5116_v47, 8 }
 0x221   : > { %3682 = vxpose.xlu1.b32.cont [11/16] (narrow) %v5119_v55, 8 }
 0x225   : > { %3683 = vxpose.xlu1.b32.cont [12/16] (narrow) %v5118_v53, 8 }
 0x229   : > { %3684 = vxpose.xlu1.b32.cont [13/16] (narrow) %v5121_v1, 8 }
 0x22d   : > { %3685 = vxpose.xlu1.b32.cont [14/16] (narrow) %v5120_v63, 8 }
 0x231   : > { %3686 = vxpose.xlu1.b32.cont [15/16] (narrow) %v5123_v8, 8 }
 0x235   : > { %3687 = vxpose.xlu1.b32.end [16/16] (narrow) %v5122_v6, 8 }
 0x259   : > { %v3656_v12 = vpop.trf.xlu0 }
 0x25a   : > { %v3715_v58 = vmul.f32 (!%p4338_p9), %v3656_v12, %v3656_v12 }
 0x273   : > { %3706 = sbr.rel (%p4338_p9) target bundleno = 791 (0x317), region = 40 }
 0x279   : > { %v3688_v18 = vpop.trf.xlu1 }
 0x27a   : > { %v3708_v56 = vadd.f32 %v3688_v18, %v3656_v12  ;;  %v3716_v29 = vmul.f32 %v3688_v18, %v3688_v18 }
 0x27c   : > { %3709 = vadd.xlane.f32.xlu0 %v3708_v56  ;;  %v3717_v25 = vadd.f32 %v3716_v29, %v3715_v58 }
 0x280   : > { %3718 = vadd.xlane.f32.xlu0 %v3717_v25 }
 0x309   : > { %v3710_v9 = vpop.xlane.xlu0 %3709 }
 0x30a   : > { %v3711_v10 = vadd.f32 %v3710_v9, %v3707_v26 }
 0x30c   : > { %3713 = vst.msk [vmem:[#allocation2] sm:$0xff] %vm3712_vm3, %v3711_v10 }
 0x30d   : > { %v3719_v13 = vpop.xlane.xlu0 %3718 }
 0x313   : > { %v3714_v15 = vld [vmem:[#allocation2] sm:$0xff] }
 0x314   : > { %v3720_v17 = vadd.f32 %v3719_v13, %v3714_v15 }
 0x316   : > { %3722 = vst.msk [vmem:[#allocation2] sm:$0xff] %vm3721_vm4, %v3720_v17 }
 0x317 PF: > { %p4339_p10 = scmp.ne.s32.totalorder %s5424_s13, 1 }
 0x318   : > { %s5439_s25 = smov (!%p4339_p10), 1   ;;  %v5440_v16 = vmov (!%p4339_p10), 0   ;;  %s5441_s26 = smov (!%p4339_p10), 127   ;;  %v5442_v2 = vmov (!%p4339_p10), 1   ;;  %v3737_v62 = vld [vmem:[%s6458_s2] sm:$0xff] (!%p4339_p10) }
 0x319   : > { %3726 = sbr.rel (%p4339_p10) target bundleno = 1301 (0x515), region = 44  ;;  %5394 = vset.pattern.permute.xlu1 (!%p4339_p10), %v5440_v16  ;;  %5395 = vset.pattern.permute.xlu0 (!%p4339_p10), %v5442_v2 }
 0x31d   : > { %v3727_v20 = vld [vmem:[#allocation2] sm:$0xff] (!%p4339_p10) }
 0x31e   : > { %v3728_v22 = vmul.f32 (!%p4339_p10), 0.001953125, %v3727_v20 }
 0x320   : > { %v3729_v23 = vmul.f32 %v3728_v22, %v3728_v22 }
 0x322   : > { %3731 = vrot.lane.b32.xlu0 %v3729_v23, %s5439_s25 }
 0x394   : > { %v3732_v38 = vpop.permute.xlu0 %3731 }
 0x395   : > { %v3734_v36 = vsub.f32 %v3728_v22, %v3732_v38 }
 0x397   : > { %v3735_v11 = vadd.f32 1e-05, %v3734_v36 }
 0x399   : > { %5396 = vrsqrt.f32 %v3735_v11 }
 0x3a3   : > { %v5397_v21 = vpop.eup %5396 }
 0x3a4   : > { %3739 = vrot.lane.b32.xlu0 %v5397_v21, %s5441_s26 }
 0x416   : > { %v3740_v60 = vpop.permute.xlu0 %3739 }
 0x417   : > { %v3742_v14 = vmul.f32 %v3740_v60, %v3737_v62 }
 0x419   : > { %v3743_v19 = vmul.f32 %v3742_v14, %v3728_v22 }
 0x41b   : > { %3745 = vrot.lane.b32.xlu1 %v3743_v19, %s5439_s25 }
 0x41f   : > { %3751 = vperm.xlu1 %5394, %v3742_v14  }
 0x48d   : > { %v3746_v24 = vpop.permute.xlu1 %3745 }
 0x48e   : > { %v3748_v27 = vsub.f32 %v3737_v62, %v3746_v24 }
 0x490   : > { %3758 = vperm.xlu0 %5395, %v3748_v27  }
 0x49e   : > { %v3752_v28 = vpop.permute.xlu1 %3751 }
 0x49f   : > { %v3754_v30 = vmul.f32 %v3752_v28, %v3656_v12  ;;  %v3755_v31 = vmul.f32 %v3752_v28, %v3688_v18 }
 0x50f   : > { %v3759_v32 = vpop.permute.xlu0 %3758 }
 0x510   : > { %v3761_v33 = vadd.f32 %v3759_v32, %v3754_v30  ;;  %v3762_v34 = vadd.f32 %v3759_v32, %v3755_v31 }
 0x512   : > { %v3763_v35 = vmax.f32 %v3761_v33, 0.0  ;;  %v3764_v37 = vmax.f32 %v3762_v34, 0.0 }
 0x514   : > { %3765 = vst [vmem:[%s5499_s23] sm:$0xff] %v3763_v35  ;;  %3766 = vst [vmem:[%s5499_s23 + $0x8] sm:$0xff] %v3764_v37 }
 0x515 PF: > { %s13_s16 = sadd.s32 1, %s5436_s16   ;;  %s6569_s12 = smov %s5428_s14 }
 0x516   : > { %p10_p11 = scmp.ge.s32.totalorder %s13_s16, 6   ;;  %s6570_s13 = smov %s5432_s15 }
 0x517   : > { %s6571_s14 = smov %s6574_s17  ;;  %s6572_s15 = smov %s6578_s18 }
 0x518   :  { %12 = sbr.rel (!%p10_p11) target bundleno = 3 (0x3), region = 84 }

</bundles_post_ra>
